<compile_context>
chip_gen: v5e
topology: v5e:2x2
jax: 0.10.0
libtpu: 0.0.40
codegen_flags: <defaults>
</compile_context>

<pallas_src>
import jax
import jax.numpy as jnp
from jax.experimental import pallas as pl
from jax.experimental.pallas import tpu as pltpu

# ---- sizes (small, consistent with the module's structure) ----
B, T = 2, 4                      # batch, time steps
C_IN, H, W = 3, 16, 16           # frame channels / spatial
CONV_OUT = 16                    # CONV_NEURONS_CONST
POOL_K = 4
OH, OW = H // POOL_K, W // POOL_K          # 4, 4
NPIX = OH * OW                             # 16 pooled pixels per frame
NWIN = POOL_K * POOL_K                     # 16 positions per pool window
NFRAMES = B * T                            # 8 frames
PATCH_F = 9 * C_IN                         # 27 im2col features
CONV_COLS = NPIX * PATCH_F                 # 432 = (pixel, feature) columns
LSTM_IN = CONV_OUT * NPIX                  # calculate_flatten_dim = 256
UNITS = 32                                 # UNITS_CONST (== UNITS_BOUND)
GATES = 4 * UNITS                          # 128
DENSE = 128                                # DENSE_NEURONS_CONST
NUM_CLASSES = 5                  # TODO(synk): len(unique_class_labels) is an undefined global in the source; 5 chosen.
BN_EPS = 1e-5
LANES = LSTM_IN                            # packed-slab lane width (256)

# ---- packed-operand row offsets ----
# bf16 slab (MXU weights), 256 lanes:
WBIG_OFF = 0                               # kron(I_16, Wconv): rows 0..431
WIH_OFF = CONV_COLS                        # permuted W_ih:     rows 432..687
WBF_ROWS = WIH_OFF + LSTM_IN               # 688
# f32 slab (vector params + recurrent/head weights + BN stats matrix), 256 lanes:
VEC_OFF = 0                                # 8 rows of packed row-vectors
WHH_OFF = 8                                # W_hh^T  rows 8..39
W1_OFF = WHH_OFF + UNITS                   # fc1^T   rows 40..71
W2_OFF = W1_OFF + UNITS                    # out^T   rows 72..199
PSTAT_OFF = W2_OFF + DENSE                 # BN P    rows 200..455
WF32_ROWS = PSTAT_OFF + LSTM_IN            # 456


# ----------------------------------------------------------------------------
# Single fused kernel: conv -> maxpool -> bias+relu -> batchnorm -> flatten ->
# LSTM (last step) -> dense+relu -> classifier.  No in-kernel relayouts.
# ----------------------------------------------------------------------------
def fused_net_kernel(patches_ref, wbf_ref, wf32_ref, out_ref):
    # --- Conv2d 3x3 'same' for all frames & pooled pixels in ONE lane-dense
    #     matmul.  patches rows = (window pos q, frame n), cols = (pixel p,
    #     im2col feature f); weight = kron(I_16, Wconv) so output columns are
    #     already (p, channel c).  Result: (128, 256) f32. ---
    conv = jnp.dot(patches_ref[...], wbf_ref[WBIG_OFF:WBIG_OFF + CONV_COLS, :],
                   preferred_element_type=jnp.float32)

    # --- MaxPool2d 4x4 / stride 4: window position q is the aligned 8-row
    #     sublane-tile slice conv[q*8:(q+1)*8]; depth-4 pairwise max tree. ---
    parts = [conv[q * NFRAMES:(q + 1) * NFRAMES, :] for q in range(NWIN)]
    while len(parts) > 1:
        parts = [jnp.maximum(parts[i], parts[i + 1])
                 for i in range(0, len(parts), 2)]
    pooled = parts[0]                                             # (8, 256)

    # --- packed row-vector params (one 8x256 tile) ---
    vecs = wf32_ref[VEC_OFF:VEC_OFF + 8, :]
    bias_b, gamma_b, beta_b = vecs[0:1, :], vecs[1:2, :], vecs[2:3, :]
    blstm = vecs[3:4, 0:GATES]
    b1 = vecs[4:5, 0:DENSE]
    b2 = vecs[5:6, 0:DENSE]

    # conv bias-add and ReLU are monotonic -> commute with the max; applying
    # them once after pooling is numerically identical.
    act = jnp.maximum(pooled + bias_b, 0.0)                       # (8, 256)

    # --- BatchNorm2d(16): training-mode biased batch statistics.  Per-channel
    #     reduce/broadcast over the 16 lane-strided pixel positions is one
    #     constant matmul with P[(p',c'),(p,c)] = (c'==c)/128 (f32, exact). ---
    pmat = wf32_ref[PSTAT_OFF:PSTAT_OFF + LSTM_IN, :]             # (256, 256)
    mean_b = jnp.dot(jnp.sum(act, axis=0, keepdims=True), pmat,
                     preferred_element_type=jnp.float32)          # (1, 256)
    cent = act - mean_b
    var_b = jnp.dot(jnp.sum(cent * cent, axis=0, keepdims=True), pmat,
                    preferred_element_type=jnp.float32)           # (1, 256)
    bn = cent * jax.lax.rsqrt(var_b + BN_EPS) * gamma_b + beta_b  # (8, 256)

    # --- Flatten(start_dim=2) + LSTM input projection for all T*B frames as a
    #     single K=256 matmul; the NCHW flatten order (c*16+p) is baked into a
    #     W_ih row permutation done on the parameters in the wrapper. ---
    xproj = jnp.dot(bn.astype(jnp.bfloat16),
                    wbf_ref[WIH_OFF:WIH_OFF + LSTM_IN, 0:GATES],
                    preferred_element_type=jnp.float32) + blstm   # (8, 128)

    # --- LSTM recurrence, T=4 fully unrolled, h/c carried in vregs.
    #     Frames are ordered (t, b), so step t is rows [t*B, (t+1)*B). ---
    whh = wf32_ref[WHH_OFF:WHH_OFF + UNITS, 0:GATES]
    h = jnp.zeros((B, UNITS), jnp.float32)
    c = jnp.zeros((B, UNITS), jnp.float32)
    for t in range(T):
        g = xproj[t * B:(t + 1) * B, :] + jnp.dot(
            h, whh, preferred_element_type=jnp.float32)           # (B, 128)
        i_g = jax.nn.sigmoid(g[:, 0 * UNITS:1 * UNITS])
        f_g = jax.nn.sigmoid(g[:, 1 * UNITS:2 * UNITS])
        g_g = jnp.tanh(g[:, 2 * UNITS:3 * UNITS])
        o_g = jax.nn.sigmoid(g[:, 3 * UNITS:4 * UNITS])
        c = f_g * c + i_g * g_g
        h = o_g * jnp.tanh(c)
    # 'Forget Sequence' -> only the last hidden state h is used.

    # --- dense head: Linear(32->128)+ReLU, then classifier Linear(128->NC),
    #     written as a lane-dense (B, 128) tile (classes in lanes 0..NC-1). ---
    hid = jnp.maximum(
        jnp.dot(h, wf32_ref[W1_OFF:W1_OFF + UNITS, 0:DENSE],
                preferred_element_type=jnp.float32) + b1, 0.0)
    out_ref[...] = jnp.dot(hid, wf32_ref[W2_OFF:W2_OFF + DENSE, 0:DENSE],
                           preferred_element_type=jnp.float32) + b2


# ----------------------------------------------------------------------------
# Wrapper: im2col + row/col ordering of the input, parameter packing into two
# lane-dense slabs, one grid-less pallas_call, final class slice.
# ----------------------------------------------------------------------------
def net_forward(x, p):
    # x: (B, T, C, H, W) float32 -- TimeDistributed NCHW frames.
    # Frames ordered (t, b) so each LSTM timestep is a contiguous row block.
    # TODO(synk): at larger H/W move tap construction in-kernel (shifted slices
    # feeding 9 accumulating matmuls) to avoid the 9x patch expansion.
    xf = jnp.transpose(x, (1, 0, 3, 4, 2)).reshape(NFRAMES, H, W, C_IN)
    xp = jnp.pad(xf, ((0, 0), (1, 1), (1, 1), (0, 0)))            # 'same' pad
    taps = [xp[:, dy:dy + H, dx:dx + W, :] for dy in range(3) for dx in range(3)]
    pat = jnp.concatenate(taps, axis=-1)                          # (N, H, W, 27)
    pat = pat.reshape(NFRAMES, OH, POOL_K, OW, POOL_K, PATCH_F)   # [n,oh,i,ow,j,f]
    pat = jnp.transpose(pat, (2, 4, 0, 1, 3, 5))                  # [i,j,n,oh,ow,f]
    patches = pat.reshape(NWIN * NFRAMES, CONV_COLS).astype(jnp.bfloat16)  # (128,432)

    # ---- bf16 MXU-weight slab: block-diagonal conv weight + permuted W_ih ----
    # PyTorch conv weight (Cout, Cin, kh, kw) -> (kh, kw, Cin, Cout) -> (27, 16)
    wconv = jnp.transpose(p['conv_w'], (2, 3, 1, 0)).reshape(PATCH_F, CONV_OUT)
    wbig = jnp.kron(jnp.eye(NPIX, dtype=jnp.float32), wconv)      # (432, 256)
    # LSTM W_ih (128, 256): input feature index is c*16 + p (Flatten NCHW order);
    # permute rows to (p*16 + c) so the kernel's (pixel, channel) columns line up.
    wih = p['lstm_w_ih'].reshape(GATES, CONV_OUT, NPIX)
    wih = jnp.transpose(wih, (2, 1, 0)).reshape(LSTM_IN, GATES)
    wih = jnp.pad(wih, ((0, 0), (0, LANES - GATES)))              # (256, 256)
    wbf = jnp.concatenate([wbig, wih], axis=0).astype(jnp.bfloat16)  # (688, 256)

    # ---- f32 slab: row-vector params, recurrent/head weights, BN stats matrix ----
    def row(v):
        v = v.reshape(1, -1)
        return jnp.pad(v, ((0, 0), (0, LANES - v.shape[1])))
    vec_rows = jnp.concatenate([
        row(jnp.tile(p['conv_b'], NPIX)),                         # 0: conv bias (p,c)
        row(jnp.tile(p['bn_g'], NPIX)),                           # 1: gamma   (p,c)
        row(jnp.tile(p['bn_b'], NPIX)),                           # 2: beta    (p,c)
        row(p['lstm_b_ih'] + p['lstm_b_hh']),                     # 3: lstm bias
        row(p['fc1_b']),                                          # 4: fc1 bias
        row(jnp.pad(p['out_b'], (0, DENSE - NUM_CLASSES))),       # 5: out bias
        jnp.zeros((2, LANES), jnp.float32),                       # 6,7: tile pad
    ], axis=0)
    whh = jnp.pad(p['lstm_w_hh'].T, ((0, 0), (0, LANES - GATES)))     # (32, 256)
    w1 = jnp.pad(p['fc1_w'].T, ((0, 0), (0, LANES - DENSE)))          # (32, 256)
    w2 = jnp.pad(p['out_w'].T, ((0, 0), (0, LANES - NUM_CLASSES)))    # (128, 256)
    # BN per-channel reduce/broadcast matrix over the 16 lane-strided pixels.
    pmat = jnp.kron(jnp.ones((NPIX, NPIX), jnp.float32),
                    jnp.eye(CONV_OUT, dtype=jnp.float32)) / float(NPIX * NFRAMES)
    wf32 = jnp.concatenate([vec_rows, whh, w1, w2, pmat], axis=0)     # (456, 256)

    logits = pl.pallas_call(
        fused_net_kernel,
        out_shape=jax.ShapeDtypeStruct((B, DENSE), jnp.float32),
        compiler_params=pltpu.CompilerParams(
            vmem_limit_bytes=8 * 1024 * 1024),
    )(patches, wbf, wf32)
    return logits[:, :NUM_CLASSES]


def init_params(key):
    ks = jax.random.split(key, 10)

    def u(k, shape, fan_in):
        bound = 1.0 / jnp.sqrt(jnp.float32(fan_in))
        return jax.random.uniform(k, shape, jnp.float32, -bound, bound)

    return dict(
        conv_w=u(ks[0], (CONV_OUT, C_IN, 3, 3), C_IN * 9),
        conv_b=u(ks[1], (CONV_OUT,), C_IN * 9),
        bn_g=jnp.ones((CONV_OUT,), jnp.float32),                  # PyTorch BN init
        bn_b=jnp.zeros((CONV_OUT,), jnp.float32),
        lstm_w_ih=u(ks[2], (GATES, LSTM_IN), UNITS),
        lstm_w_hh=u(ks[3], (GATES, UNITS), UNITS),
        lstm_b_ih=u(ks[4], (GATES,), UNITS),
        lstm_b_hh=u(ks[5], (GATES,), UNITS),
        fc1_w=u(ks[6], (DENSE, UNITS), UNITS),
        fc1_b=u(ks[7], (DENSE,), UNITS),
        out_w=u(ks[8], (NUM_CLASSES, DENSE), DENSE),
        out_b=u(ks[9], (NUM_CLASSES,), DENSE),
    )


if __name__ == "__main__":
    key = jax.random.PRNGKey(0)
    k_x, k_p = jax.random.split(key)
    x = jax.random.normal(k_x, (B, T, C_IN, H, W), jnp.float32)
    params = init_params(k_p)

    logits = jax.jit(net_forward)(x, params)
    logits = jax.block_until_ready(logits)

    assert logits.shape == (B, NUM_CLASSES)
    assert bool(jnp.all(jnp.isfinite(logits)))
    print("KERNEL_OK")
</pallas_src>

<mosaic_0001>
module attributes {stable_mosaic.version = 11 : i64} {
  func.func @fused_net_kernel(%arg0: memref<128x432xbf16, #tpu.memory_space<vmem>>, %arg1: memref<688x256xbf16, #tpu.memory_space<vmem>>, %arg2: memref<456x256xf32, #tpu.memory_space<vmem>>, %arg3: memref<2x128xf32, #tpu.memory_space<vmem>>) attributes {dimension_semantics = [], scalar_prefetch = 0 : i64, scratch_operands = 0 : i64, tpu.core_type = #tpu.core_type<tc>} {
    %c0 = arith.constant 0 : index
    %c0_0 = arith.constant 0 : index
    %0 = vector.load %arg0[%c0, %c0_0] : memref<128x432xbf16, #tpu.memory_space<vmem>>, vector<128x432xbf16>
    %c0_1 = arith.constant 0 : index
    %c0_2 = arith.constant 0 : index
    %1 = vector.load %arg1[%c0_1, %c0_2] : memref<688x256xbf16, #tpu.memory_space<vmem>>, vector<432x256xbf16>
    %cst = arith.constant dense<0.000000e+00> : vector<128x256xf32>
    %2 = tpu.matmul %0, %1, %cst {dimension_numbers = #tpu.dot_dimension_numbers<[1], [0], [0], [1], [0, 0, 1, 1], [], []>} : vector<128x432xbf16>, vector<432x256xbf16>, vector<128x256xf32> -> vector<128x256xf32>
    %3 = vector.extract_strided_slice %2 {offsets = [0, 0], sizes = [8, 256], strides = [1, 1]} : vector<128x256xf32> to vector<8x256xf32>
    %4 = vector.extract_strided_slice %2 {offsets = [8, 0], sizes = [8, 256], strides = [1, 1]} : vector<128x256xf32> to vector<8x256xf32>
    %5 = vector.extract_strided_slice %2 {offsets = [16, 0], sizes = [8, 256], strides = [1, 1]} : vector<128x256xf32> to vector<8x256xf32>
    %6 = vector.extract_strided_slice %2 {offsets = [24, 0], sizes = [8, 256], strides = [1, 1]} : vector<128x256xf32> to vector<8x256xf32>
    %7 = vector.extract_strided_slice %2 {offsets = [32, 0], sizes = [8, 256], strides = [1, 1]} : vector<128x256xf32> to vector<8x256xf32>
    %8 = vector.extract_strided_slice %2 {offsets = [40, 0], sizes = [8, 256], strides = [1, 1]} : vector<128x256xf32> to vector<8x256xf32>
    %9 = vector.extract_strided_slice %2 {offsets = [48, 0], sizes = [8, 256], strides = [1, 1]} : vector<128x256xf32> to vector<8x256xf32>
    %10 = vector.extract_strided_slice %2 {offsets = [56, 0], sizes = [8, 256], strides = [1, 1]} : vector<128x256xf32> to vector<8x256xf32>
    %11 = vector.extract_strided_slice %2 {offsets = [64, 0], sizes = [8, 256], strides = [1, 1]} : vector<128x256xf32> to vector<8x256xf32>
    %12 = vector.extract_strided_slice %2 {offsets = [72, 0], sizes = [8, 256], strides = [1, 1]} : vector<128x256xf32> to vector<8x256xf32>
    %13 = vector.extract_strided_slice %2 {offsets = [80, 0], sizes = [8, 256], strides = [1, 1]} : vector<128x256xf32> to vector<8x256xf32>
    %14 = vector.extract_strided_slice %2 {offsets = [88, 0], sizes = [8, 256], strides = [1, 1]} : vector<128x256xf32> to vector<8x256xf32>
    %15 = vector.extract_strided_slice %2 {offsets = [96, 0], sizes = [8, 256], strides = [1, 1]} : vector<128x256xf32> to vector<8x256xf32>
    %16 = vector.extract_strided_slice %2 {offsets = [104, 0], sizes = [8, 256], strides = [1, 1]} : vector<128x256xf32> to vector<8x256xf32>
    %17 = vector.extract_strided_slice %2 {offsets = [112, 0], sizes = [8, 256], strides = [1, 1]} : vector<128x256xf32> to vector<8x256xf32>
    %18 = vector.extract_strided_slice %2 {offsets = [120, 0], sizes = [8, 256], strides = [1, 1]} : vector<128x256xf32> to vector<8x256xf32>
    %19 = arith.maximumf %3, %4 : vector<8x256xf32>
    %20 = arith.maximumf %5, %6 : vector<8x256xf32>
    %21 = arith.maximumf %7, %8 : vector<8x256xf32>
    %22 = arith.maximumf %9, %10 : vector<8x256xf32>
    %23 = arith.maximumf %11, %12 : vector<8x256xf32>
    %24 = arith.maximumf %13, %14 : vector<8x256xf32>
    %25 = arith.maximumf %15, %16 : vector<8x256xf32>
    %26 = arith.maximumf %17, %18 : vector<8x256xf32>
    %27 = arith.maximumf %19, %20 : vector<8x256xf32>
    %28 = arith.maximumf %21, %22 : vector<8x256xf32>
    %29 = arith.maximumf %23, %24 : vector<8x256xf32>
    %30 = arith.maximumf %25, %26 : vector<8x256xf32>
    %31 = arith.maximumf %27, %28 : vector<8x256xf32>
    %32 = arith.maximumf %29, %30 : vector<8x256xf32>
    %33 = arith.maximumf %31, %32 : vector<8x256xf32>
    %c0_3 = arith.constant 0 : index
    %c0_4 = arith.constant 0 : index
    %34 = vector.load %arg2[%c0_3, %c0_4] : memref<456x256xf32, #tpu.memory_space<vmem>>, vector<8x256xf32>
    %35 = vector.extract_strided_slice %34 {offsets = [0, 0], sizes = [1, 256], strides = [1, 1]} : vector<8x256xf32> to vector<1x256xf32>
    %36 = vector.extract_strided_slice %34 {offsets = [1, 0], sizes = [1, 256], strides = [1, 1]} : vector<8x256xf32> to vector<1x256xf32>
    %37 = vector.extract_strided_slice %34 {offsets = [2, 0], sizes = [1, 256], strides = [1, 1]} : vector<8x256xf32> to vector<1x256xf32>
    %38 = vector.extract_strided_slice %34 {offsets = [3, 0], sizes = [1, 128], strides = [1, 1]} : vector<8x256xf32> to vector<1x128xf32>
    %39 = vector.extract_strided_slice %34 {offsets = [4, 0], sizes = [1, 128], strides = [1, 1]} : vector<8x256xf32> to vector<1x128xf32>
    %40 = vector.extract_strided_slice %34 {offsets = [5, 0], sizes = [1, 128], strides = [1, 1]} : vector<8x256xf32> to vector<1x128xf32>
    %41 = vector.broadcast %35 : vector<1x256xf32> to vector<8x256xf32>
    %42 = arith.addf %33, %41 : vector<8x256xf32>
    %cst_5 = arith.constant 0.000000e+00 : f32
    %43 = vector.broadcast %cst_5 : f32 to vector<8x256xf32>
    %44 = arith.maximumf %42, %43 : vector<8x256xf32>
    %c200 = arith.constant 200 : index
    %c0_6 = arith.constant 0 : index
    %45 = vector.load %arg2[%c200, %c0_6] : memref<456x256xf32, #tpu.memory_space<vmem>>, vector<256x256xf32>
    %cst_7 = arith.constant dense<0.000000e+00> : vector<256xf32>
    %46 = vector.multi_reduction <add>, %44, %cst_7 [0] : vector<8x256xf32> to vector<256xf32>
    %47 = vector.shape_cast %46 : vector<256xf32> to vector<1x256xf32>
    %cst_8 = arith.constant dense<0.000000e+00> : vector<1x256xf32>
    %48 = tpu.matmul %47, %45, %cst_8 {dimension_numbers = #tpu.dot_dimension_numbers<[1], [0], [0], [1], [0, 0, 1, 1], [], []>} : vector<1x256xf32>, vector<256x256xf32>, vector<1x256xf32> -> vector<1x256xf32>
    %49 = vector.broadcast %48 : vector<1x256xf32> to vector<8x256xf32>
    %50 = arith.subf %44, %49 : vector<8x256xf32>
    %51 = arith.mulf %50, %50 : vector<8x256xf32>
    %cst_9 = arith.constant dense<0.000000e+00> : vector<256xf32>
    %52 = vector.multi_reduction <add>, %51, %cst_9 [0] : vector<8x256xf32> to vector<256xf32>
    %53 = vector.shape_cast %52 : vector<256xf32> to vector<1x256xf32>
    %cst_10 = arith.constant dense<0.000000e+00> : vector<1x256xf32>
    %54 = tpu.matmul %53, %45, %cst_10 {dimension_numbers = #tpu.dot_dimension_numbers<[1], [0], [0], [1], [0, 0, 1, 1], [], []>} : vector<1x256xf32>, vector<256x256xf32>, vector<1x256xf32> -> vector<1x256xf32>
    %cst_11 = arith.constant 9.99999974E-6 : f32
    %55 = vector.broadcast %cst_11 : f32 to vector<1x256xf32>
    %56 = arith.addf %54, %55 : vector<1x256xf32>
    %57 = math.rsqrt %56 : vector<1x256xf32>
    %58 = vector.broadcast %57 : vector<1x256xf32> to vector<8x256xf32>
    %59 = arith.mulf %50, %58 : vector<8x256xf32>
    %60 = vector.broadcast %36 : vector<1x256xf32> to vector<8x256xf32>
    %61 = arith.mulf %59, %60 : vector<8x256xf32>
    %62 = vector.broadcast %37 : vector<1x256xf32> to vector<8x256xf32>
    %63 = arith.addf %61, %62 : vector<8x256xf32>
    %64 = arith.truncf %63 : vector<8x256xf32> to vector<8x256xbf16>
    %c432 = arith.constant 432 : index
    %c0_12 = arith.constant 0 : index
    %65 = vector.load %arg1[%c432, %c0_12] : memref<688x256xbf16, #tpu.memory_space<vmem>>, vector<256x128xbf16>
    %cst_13 = arith.constant dense<0.000000e+00> : vector<8x128xf32>
    %66 = tpu.matmul %64, %65, %cst_13 {dimension_numbers = #tpu.dot_dimension_numbers<[1], [0], [0], [1], [0, 0, 1, 1], [], []>} : vector<8x256xbf16>, vector<256x128xbf16>, vector<8x128xf32> -> vector<8x128xf32>
    %67 = vector.broadcast %38 : vector<1x128xf32> to vector<8x128xf32>
    %68 = arith.addf %66, %67 : vector<8x128xf32>
    %c8 = arith.constant 8 : index
    %c0_14 = arith.constant 0 : index
    %69 = vector.load %arg2[%c8, %c0_14] : memref<456x256xf32, #tpu.memory_space<vmem>>, vector<32x128xf32>
    %cst_15 = arith.constant 0.000000e+00 : f32
    %70 = vector.broadcast %cst_15 : f32 to vector<2x32xf32>
    %cst_16 = arith.constant 0.000000e+00 : f32
    %71 = vector.broadcast %cst_16 : f32 to vector<2x32xf32>
    %72 = vector.extract_strided_slice %68 {offsets = [0, 0], sizes = [2, 128], strides = [1, 1]} : vector<8x128xf32> to vector<2x128xf32>
    %cst_17 = arith.constant dense<0.000000e+00> : vector<2x128xf32>
    %73 = tpu.matmul %70, %69, %cst_17 {dimension_numbers = #tpu.dot_dimension_numbers<[1], [0], [0], [1], [0, 0, 1, 1], [], []>} : vector<2x32xf32>, vector<32x128xf32>, vector<2x128xf32> -> vector<2x128xf32>
    %74 = arith.addf %72, %73 : vector<2x128xf32>
    %75 = vector.extract_strided_slice %74 {offsets = [0, 0], sizes = [2, 32], strides = [1, 1]} : vector<2x128xf32> to vector<2x32xf32>
    %76 = arith.negf %75 : vector<2x32xf32>
    %77 = math.exp %76 : vector<2x32xf32>
    %cst_18 = arith.constant 1.000000e+00 : f32
    %78 = vector.broadcast %cst_18 : f32 to vector<2x32xf32>
    %79 = arith.addf %78, %77 : vector<2x32xf32>
    %80 = arith.divf %78, %79 : vector<2x32xf32>
    %81 = vector.extract_strided_slice %74 {offsets = [0, 32], sizes = [2, 32], strides = [1, 1]} : vector<2x128xf32> to vector<2x32xf32>
    %82 = arith.negf %81 : vector<2x32xf32>
    %83 = math.exp %82 : vector<2x32xf32>
    %cst_19 = arith.constant 1.000000e+00 : f32
    %84 = vector.broadcast %cst_19 : f32 to vector<2x32xf32>
    %85 = arith.addf %84, %83 : vector<2x32xf32>
    %86 = arith.divf %84, %85 : vector<2x32xf32>
    %87 = vector.extract_strided_slice %74 {offsets = [0, 64], sizes = [2, 32], strides = [1, 1]} : vector<2x128xf32> to vector<2x32xf32>
    %88 = math.tanh %87 : vector<2x32xf32>
    %89 = vector.extract_strided_slice %74 {offsets = [0, 96], sizes = [2, 32], strides = [1, 1]} : vector<2x128xf32> to vector<2x32xf32>
    %90 = arith.negf %89 : vector<2x32xf32>
    %91 = math.exp %90 : vector<2x32xf32>
    %cst_20 = arith.constant 1.000000e+00 : f32
    %92 = vector.broadcast %cst_20 : f32 to vector<2x32xf32>
    %93 = arith.addf %92, %91 : vector<2x32xf32>
    %94 = arith.divf %92, %93 : vector<2x32xf32>
    %95 = arith.mulf %86, %71 : vector<2x32xf32>
    %96 = arith.mulf %80, %88 : vector<2x32xf32>
    %97 = arith.addf %95, %96 : vector<2x32xf32>
    %98 = math.tanh %97 : vector<2x32xf32>
    %99 = arith.mulf %94, %98 : vector<2x32xf32>
    %100 = vector.extract_strided_slice %68 {offsets = [2, 0], sizes = [2, 128], strides = [1, 1]} : vector<8x128xf32> to vector<2x128xf32>
    %cst_21 = arith.constant dense<0.000000e+00> : vector<2x128xf32>
    %101 = tpu.matmul %99, %69, %cst_21 {dimension_numbers = #tpu.dot_dimension_numbers<[1], [0], [0], [1], [0, 0, 1, 1], [], []>} : vector<2x32xf32>, vector<32x128xf32>, vector<2x128xf32> -> vector<2x128xf32>
    %102 = arith.addf %100, %101 : vector<2x128xf32>
    %103 = vector.extract_strided_slice %102 {offsets = [0, 0], sizes = [2, 32], strides = [1, 1]} : vector<2x128xf32> to vector<2x32xf32>
    %104 = arith.negf %103 : vector<2x32xf32>
    %105 = math.exp %104 : vector<2x32xf32>
    %cst_22 = arith.constant 1.000000e+00 : f32
    %106 = vector.broadcast %cst_22 : f32 to vector<2x32xf32>
    %107 = arith.addf %106, %105 : vector<2x32xf32>
    %108 = arith.divf %106, %107 : vector<2x32xf32>
    %109 = vector.extract_strided_slice %102 {offsets = [0, 32], sizes = [2, 32], strides = [1, 1]} : vector<2x128xf32> to vector<2x32xf32>
    %110 = arith.negf %109 : vector<2x32xf32>
    %111 = math.exp %110 : vector<2x32xf32>
    %cst_23 = arith.constant 1.000000e+00 : f32
    %112 = vector.broadcast %cst_23 : f32 to vector<2x32xf32>
    %113 = arith.addf %112, %111 : vector<2x32xf32>
    %114 = arith.divf %112, %113 : vector<2x32xf32>
    %115 = vector.extract_strided_slice %102 {offsets = [0, 64], sizes = [2, 32], strides = [1, 1]} : vector<2x128xf32> to vector<2x32xf32>
    %116 = math.tanh %115 : vector<2x32xf32>
    %117 = vector.extract_strided_slice %102 {offsets = [0, 96], sizes = [2, 32], strides = [1, 1]} : vector<2x128xf32> to vector<2x32xf32>
    %118 = arith.negf %117 : vector<2x32xf32>
    %119 = math.exp %118 : vector<2x32xf32>
    %cst_24 = arith.constant 1.000000e+00 : f32
    %120 = vector.broadcast %cst_24 : f32 to vector<2x32xf32>
    %121 = arith.addf %120, %119 : vector<2x32xf32>
    %122 = arith.divf %120, %121 : vector<2x32xf32>
    %123 = arith.mulf %114, %97 : vector<2x32xf32>
    %124 = arith.mulf %108, %116 : vector<2x32xf32>
    %125 = arith.addf %123, %124 : vector<2x32xf32>
    %126 = math.tanh %125 : vector<2x32xf32>
    %127 = arith.mulf %122, %126 : vector<2x32xf32>
    %128 = vector.extract_strided_slice %68 {offsets = [4, 0], sizes = [2, 128], strides = [1, 1]} : vector<8x128xf32> to vector<2x128xf32>
    %cst_25 = arith.constant dense<0.000000e+00> : vector<2x128xf32>
    %129 = tpu.matmul %127, %69, %cst_25 {dimension_numbers = #tpu.dot_dimension_numbers<[1], [0], [0], [1], [0, 0, 1, 1], [], []>} : vector<2x32xf32>, vector<32x128xf32>, vector<2x128xf32> -> vector<2x128xf32>
    %130 = arith.addf %128, %129 : vector<2x128xf32>
    %131 = vector.extract_strided_slice %130 {offsets = [0, 0], sizes = [2, 32], strides = [1, 1]} : vector<2x128xf32> to vector<2x32xf32>
    %132 = arith.negf %131 : vector<2x32xf32>
    %133 = math.exp %132 : vector<2x32xf32>
    %cst_26 = arith.constant 1.000000e+00 : f32
    %134 = vector.broadcast %cst_26 : f32 to vector<2x32xf32>
    %135 = arith.addf %134, %133 : vector<2x32xf32>
    %136 = arith.divf %134, %135 : vector<2x32xf32>
    %137 = vector.extract_strided_slice %130 {offsets = [0, 32], sizes = [2, 32], strides = [1, 1]} : vector<2x128xf32> to vector<2x32xf32>
    %138 = arith.negf %137 : vector<2x32xf32>
    %139 = math.exp %138 : vector<2x32xf32>
    %cst_27 = arith.constant 1.000000e+00 : f32
    %140 = vector.broadcast %cst_27 : f32 to vector<2x32xf32>
    %141 = arith.addf %140, %139 : vector<2x32xf32>
    %142 = arith.divf %140, %141 : vector<2x32xf32>
    %143 = vector.extract_strided_slice %130 {offsets = [0, 64], sizes = [2, 32], strides = [1, 1]} : vector<2x128xf32> to vector<2x32xf32>
    %144 = math.tanh %143 : vector<2x32xf32>
    %145 = vector.extract_strided_slice %130 {offsets = [0, 96], sizes = [2, 32], strides = [1, 1]} : vector<2x128xf32> to vector<2x32xf32>
    %146 = arith.negf %145 : vector<2x32xf32>
    %147 = math.exp %146 : vector<2x32xf32>
    %cst_28 = arith.constant 1.000000e+00 : f32
    %148 = vector.broadcast %cst_28 : f32 to vector<2x32xf32>
    %149 = arith.addf %148, %147 : vector<2x32xf32>
    %150 = arith.divf %148, %149 : vector<2x32xf32>
    %151 = arith.mulf %142, %125 : vector<2x32xf32>
    %152 = arith.mulf %136, %144 : vector<2x32xf32>
    %153 = arith.addf %151, %152 : vector<2x32xf32>
    %154 = math.tanh %153 : vector<2x32xf32>
    %155 = arith.mulf %150, %154 : vector<2x32xf32>
    %156 = vector.extract_strided_slice %68 {offsets = [6, 0], sizes = [2, 128], strides = [1, 1]} : vector<8x128xf32> to vector<2x128xf32>
    %cst_29 = arith.constant dense<0.000000e+00> : vector<2x128xf32>
    %157 = tpu.matmul %155, %69, %cst_29 {dimension_numbers = #tpu.dot_dimension_numbers<[1], [0], [0], [1], [0, 0, 1, 1], [], []>} : vector<2x32xf32>, vector<32x128xf32>, vector<2x128xf32> -> vector<2x128xf32>
    %158 = arith.addf %156, %157 : vector<2x128xf32>
    %159 = vector.extract_strided_slice %158 {offsets = [0, 0], sizes = [2, 32], strides = [1, 1]} : vector<2x128xf32> to vector<2x32xf32>
    %160 = arith.negf %159 : vector<2x32xf32>
    %161 = math.exp %160 : vector<2x32xf32>
    %cst_30 = arith.constant 1.000000e+00 : f32
    %162 = vector.broadcast %cst_30 : f32 to vector<2x32xf32>
    %163 = arith.addf %162, %161 : vector<2x32xf32>
    %164 = arith.divf %162, %163 : vector<2x32xf32>
    %165 = vector.extract_strided_slice %158 {offsets = [0, 32], sizes = [2, 32], strides = [1, 1]} : vector<2x128xf32> to vector<2x32xf32>
    %166 = arith.negf %165 : vector<2x32xf32>
    %167 = math.exp %166 : vector<2x32xf32>
    %cst_31 = arith.constant 1.000000e+00 : f32
    %168 = vector.broadcast %cst_31 : f32 to vector<2x32xf32>
    %169 = arith.addf %168, %167 : vector<2x32xf32>
    %170 = arith.divf %168, %169 : vector<2x32xf32>
    %171 = vector.extract_strided_slice %158 {offsets = [0, 64], sizes = [2, 32], strides = [1, 1]} : vector<2x128xf32> to vector<2x32xf32>
    %172 = math.tanh %171 : vector<2x32xf32>
    %173 = vector.extract_strided_slice %158 {offsets = [0, 96], sizes = [2, 32], strides = [1, 1]} : vector<2x128xf32> to vector<2x32xf32>
    %174 = arith.negf %173 : vector<2x32xf32>
    %175 = math.exp %174 : vector<2x32xf32>
    %cst_32 = arith.constant 1.000000e+00 : f32
    %176 = vector.broadcast %cst_32 : f32 to vector<2x32xf32>
    %177 = arith.addf %176, %175 : vector<2x32xf32>
    %178 = arith.divf %176, %177 : vector<2x32xf32>
    %179 = arith.mulf %170, %153 : vector<2x32xf32>
    %180 = arith.mulf %164, %172 : vector<2x32xf32>
    %181 = arith.addf %179, %180 : vector<2x32xf32>
    %182 = math.tanh %181 : vector<2x32xf32>
    %183 = arith.mulf %178, %182 : vector<2x32xf32>
    %c40 = arith.constant 40 : index
    %c0_33 = arith.constant 0 : index
    %184 = vector.load %arg2[%c40, %c0_33] : memref<456x256xf32, #tpu.memory_space<vmem>>, vector<32x128xf32>
    %cst_34 = arith.constant dense<0.000000e+00> : vector<2x128xf32>
    %185 = tpu.matmul %183, %184, %cst_34 {dimension_numbers = #tpu.dot_dimension_numbers<[1], [0], [0], [1], [0, 0, 1, 1], [], []>} : vector<2x32xf32>, vector<32x128xf32>, vector<2x128xf32> -> vector<2x128xf32>
    %186 = vector.broadcast %39 : vector<1x128xf32> to vector<2x128xf32>
    %187 = arith.addf %185, %186 : vector<2x128xf32>
    %cst_35 = arith.constant 0.000000e+00 : f32
    %188 = vector.broadcast %cst_35 : f32 to vector<2x128xf32>
    %189 = arith.maximumf %187, %188 : vector<2x128xf32>
    %c72 = arith.constant 72 : index
    %c0_36 = arith.constant 0 : index
    %190 = vector.load %arg2[%c72, %c0_36] : memref<456x256xf32, #tpu.memory_space<vmem>>, vector<128x128xf32>
    %cst_37 = arith.constant dense<0.000000e+00> : vector<2x128xf32>
    %191 = tpu.matmul %189, %190, %cst_37 {dimension_numbers = #tpu.dot_dimension_numbers<[1], [0], [0], [1], [0, 0, 1, 1], [], []>} : vector<2x128xf32>, vector<128x128xf32>, vector<2x128xf32> -> vector<2x128xf32>
    %192 = vector.broadcast %40 : vector<1x128xf32> to vector<2x128xf32>
    %193 = arith.addf %191, %192 : vector<2x128xf32>
    %c0_38 = arith.constant 0 : index
    %c0_39 = arith.constant 0 : index
    %194 = vector.load %arg3[%c0_38, %c0_39] : memref<2x128xf32, #tpu.memory_space<vmem>>, vector<2x128xf32>
    tpu.vector_store %arg3[%c0_38, %c0_39], %193 {strides = array<i32>} : memref<2x128xf32, #tpu.memory_space<vmem>>, vector<2x128xf32>,
    return
  }
}

</mosaic_0001>

<bundles_post_ra>
// kernel: tile.18
= control target key start
LH: loop header
LB: loop body
LE: loop exit
PB: predicated region body
PF: predicated region fallthrough
CT: control target
= control target key end

     0   :  { %s28_s0 = inlined_call_operand.vmem [shape: f32[16], index: 0, kind: input, shape index: {}]   ;;  %s29_s1 = inlined_call_operand.vmem [shape: f32[16,16], index: 1, kind: output, shape index: {}]  }
   0x1   :  { %v4_v0 = vld [vmem:[%s28_s0] ss:$0 sm:$0xff] }
   0x2   :  { %5 = vst [vmem:[%s29_s1] sm:$0xff] %v4_v0 }
   0x3   :  { %8 = vst [vmem:[%s29_s1 + $0x8] sm:$0xff] %v4_v0 }

// kernel: tile.19
= control target key start
LH: loop header
LB: loop body
LE: loop exit
PB: predicated region body
PF: predicated region fallthrough
CT: control target
= control target key end

     0   :  { %s7_s6 = smov 3  ;;  %s21_s9 = smov 3  ;;  %vm4_vm0 = vcmask 130048   ;;  %vm11_vm1 = vcmask 1048448   ;;  %vm18_vm2 = vcmask 917248   ;;  %vm25_vm3 = vcmask 786048   ;;  %s129_s0 = inlined_call_operand.vmem [shape: f32[16,16], index: 0, kind: input, shape index: {}]   ;;  %s130_s1 = inlined_call_operand.vmem [shape: f32[1,256], index: 1, kind: output, shape index: {}]  }
   0x1   :  { %v67_v0 = vld [vmem:[%s129_s0 + $0x7] ss:$8 sm:%s7_s6]   ;;  %s82_s10 = smov 112   ;;  %v69_v1 = vld [vmem:[%s129_s0 + $0x5] ss:$8 sm:%s21_s9]   ;;  %s83_s13 = smov 80  }
   0x2   :  { %9 = vrot.lane.b32.xlu0 %v67_v0, %s82_s10  ;;  %23 = vrot.lane.b32.xlu1 %v69_v1, %s83_s13  ;;  %s14_s14 = smov 3  ;;  %s28_s15 = smov 3  ;;  %vm32_vm4 = vcmask 654848   ;;  %vm39_vm5 = vcmask 523648   ;;  %vm46_vm6 = vcmask 392448   ;;  %vm53_vm7 = vcmask 261248  }
   0x3   :  { %s35_s16 = smov 3  ;;  %v68_v3 = vld [vmem:[%s129_s0 + $0x6] ss:$8 sm:%s14_s14]   ;;  %s84_s21 = smov 48   ;;  %v70_v4 = vld [vmem:[%s129_s0 + $0x4] ss:$8 sm:%s28_s15]  }
   0x4   :  { %v71_v2 = vld [vmem:[%s129_s0 + $0x3] ss:$8 sm:%s35_s16]   ;;  %s42_s24 = smov 3  ;;  %s85_s25 = smov 96  }
   0x5   :  { %37 = vrot.lane.b32.xlu2 %v71_v2, %s84_s21  ;;  %s86_s26 = smov 64   ;;  %s49_s27 = smov 3  ;;  %v72_v5 = vld [vmem:[%s129_s0 + $0x2] ss:$8 sm:%s42_s24]  }
   0x6   :  { %v73_v6 = vld [vmem:[%s129_s0 + $0x1] ss:$8 sm:%s49_s27]   ;;  %s87_s3 = smov 32   ;;  %s88_s4 = smov 16  }
   0x7   :  { %s2_s5 = smov 3 }
   0x8   :  { %v3_v7 = vld [vmem:[%s129_s0] ss:$8 sm:%s2_s5]  }
   0x9   :  { %5 = vst.msk [vmem:[#allocation0] ss:$8 sm:$0x3] %vm4_vm0, %v3_v7  }
   0xa   :  { %16 = vrot.lane.b32.xlu0 %v68_v3, %s85_s25  ;;  %30 = vrot.lane.b32.xlu1 %v70_v4, %s86_s26 }
   0xd   :  { %44 = vrot.lane.b32.xlu2 %v72_v5, %s87_s3 }
  0x12   :  { %51 = vrot.lane.b32.xlu0 %v73_v6, %s88_s4 }
  0x5f   :  { %v38_v8 = vpop.permute.xlu2 %37  }
  0x67   :  { %v45_v9 = vpop.permute.xlu2 %44  }
  0x74   :  { %v10_v10 = vpop.permute.xlu0 %9   ;;  %v24_v11 = vpop.permute.xlu1 %23  }
  0x75   :  { %12 = vst.msk [vmem:[#allocation0] ss:$8 sm:$0x3] %vm11_vm1, %v10_v10  }
  0x7c   :  { %v17_v12 = vpop.permute.xlu0 %16   ;;  %v31_v13 = vpop.permute.xlu1 %30  }
  0x7d   :  { %19 = vst.msk [vmem:[#allocation0] ss:$8 sm:$0x3] %vm18_vm2, %v17_v12  }
  0x7e   :  { %26 = vst.msk [vmem:[#allocation0] ss:$8 sm:$0x3] %vm25_vm3, %v24_v11  }
  0x7f   :  { %33 = vst.msk [vmem:[#allocation0] ss:$8 sm:$0x3] %vm32_vm4, %v31_v13  }
  0x80   :  { %40 = vst.msk [vmem:[#allocation0] ss:$8 sm:$0x3] %vm39_vm5, %v38_v8  }
  0x81   :  { %47 = vst.msk [vmem:[#allocation0] ss:$8 sm:$0x3] %vm46_vm6, %v45_v9  }
  0x84   :  { %v52_v14 = vpop.permute.xlu0 %51  }
  0x85   :  { %54 = vst.msk [vmem:[#allocation0] ss:$8 sm:$0x3] %vm53_vm7, %v52_v14  }
  0x8c   :  { %v57_v15 = vld [vmem:[#allocation0] sm:$0x1]  ;;  %v62_v16 = vld [vmem:[#allocation0 + $0x8] sm:$0x1] }
  0x8d   :  { %60 = vst [vmem:[%s130_s1] sm:$0x1] %v57_v15 }
  0x8e   :  { %74 = vst [vmem:[%s130_s1 + $0x1] sm:$0x1] %v62_v16 }

// kernel: mul.4
= control target key start
LH: loop header
LB: loop body
LE: loop exit
PB: predicated region body
PF: predicated region fallthrough
CT: control target
= control target key end

     0   :  { %vm39_vm0 = vcmask 130048   ;;  %s170_s0 = inlined_call_operand.vmem [shape: f32[3,3,3,16], index: 0, kind: input, shape index: {}]   ;;  %s171_s1 = inlined_call_operand.vmem [shape: f32[27,16], index: 1, kind: output, shape index: {}]  }
   0x1   :  { %v81_v0 = vld [vmem:[%s170_s0 + $0x20] sm:$0xf]  ;;  %v82_v1 = vld [vmem:[%s170_s0 + $0x1c] sm:$0xf]  ;;  %v83_v2 = vld [vmem:[%s170_s0 + $0x18] sm:$0xf] }
   0x2   :  { %7 = vst [vmem:[#allocation0 + $0x10] sm:$0xf] %v81_v0  ;;  %v84_v3 = vld [vmem:[%s170_s0 + $0x14] sm:$0xf]  ;;  %v85_v4 = vld [vmem:[%s170_s0 + $0x10] sm:$0xf] }
   0x3   :  { %11 = vst [vmem:[#allocation0 + $0x40] sm:$0xf] %v82_v1  ;;  %v86_v5 = vld [vmem:[%s170_s0 + $0xc] sm:$0xf]  ;;  %v87_v6 = vld [vmem:[%s170_s0 + $0x8] sm:$0xf] }
   0x4   :  { %15 = vst [vmem:[#allocation0 + $0x28] sm:$0xf] %v83_v2  ;;  %v88_v7 = vld [vmem:[%s170_s0 + $0x4] sm:$0xf]  ;;  %v36_v8 = vld [vmem:[%s170_s0] sm:$0xf] }
   0x5   :  { %19 = vst [vmem:[#allocation0 + $0x30] sm:$0xf] %v84_v3 }
   0x6   :  { %23 = vst [vmem:[#allocation0 + $0x20] sm:$0xf] %v85_v4 }
   0x7   :  { %27 = vst [vmem:[#allocation0 + $0x18] sm:$0xf] %v86_v5 }
   0x8   :  { %31 = vst [vmem:[#allocation0] sm:$0xf] %v87_v6 }
   0x9   :  { %35 = vst [vmem:[#allocation0 + $0x8] sm:$0xf] %v88_v7  ;;  %v77_v16 = vld [vmem:[#allocation0 + $0x10] sm:$0x7]  }
   0xa   :  { %37 = vst [vmem:[#allocation0 + $0x38] sm:$0xf] %v36_v8  ;;  %v72_v9 = vld [vmem:[#allocation0 + $0x40] sm:$0x7]  }
   0xb   :  { %v67_v10 = vld [vmem:[#allocation0 + $0x28] sm:$0x7]   ;;  %95 = vst.msk [vmem:[%s171_s1 + $0x15] sm:$0x7] %vm39_vm0, %v72_v9  }
   0xc   :  { %v62_v11 = vld [vmem:[#allocation0 + $0x30] sm:$0x7]   ;;  %94 = vst.msk [vmem:[%s171_s1 + $0x12] sm:$0x7] %vm39_vm0, %v67_v10  }
   0xd   :  { %v57_v12 = vld [vmem:[#allocation0 + $0x20] sm:$0x7]   ;;  %93 = vst.msk [vmem:[%s171_s1 + $0xf] sm:$0x7] %vm39_vm0, %v62_v11  }
   0xe   :  { %v52_v13 = vld [vmem:[#allocation0 + $0x18] sm:$0x7]   ;;  %92 = vst.msk [vmem:[%s171_s1 + $0xc] sm:$0x7] %vm39_vm0, %v57_v12  }
   0xf   :  { %v47_v14 = vld [vmem:[#allocation0] sm:$0x7]   ;;  %91 = vst.msk [vmem:[%s171_s1 + $0x9] sm:$0x7] %vm39_vm0, %v52_v13  }
  0x10   :  { %v42_v15 = vld [vmem:[#allocation0 + $0x8] sm:$0x7]   ;;  %90 = vst.msk [vmem:[%s171_s1 + $0x6] sm:$0x7] %vm39_vm0, %v47_v14  }
  0x11   :  { %v38_v17 = vld [vmem:[#allocation0 + $0x38] sm:$0x7]   ;;  %89 = vst.msk [vmem:[%s171_s1 + $0x3] sm:$0x7] %vm39_vm0, %v42_v15  }
  0x12   :  { %40 = vst.msk [vmem:[%s171_s1] sm:$0x7] %vm39_vm0, %v38_v17  }
  0x13   :  { %96 = vst.msk [vmem:[%s171_s1 + $0x18] sm:$0x7] %vm39_vm0, %v77_v16  }

// kernel: net_forward.1
= control target key start
LH: loop header
LB: loop body
LE: loop exit
PB: predicated region body
PF: predicated region fallthrough
CT: control target
= control target key end

     0   :  { %vm524_vm0 = vcmask 392192   ;;  %s3853_s0 = inlined_call_operand.vmem [shape: bf16[128,432], index: 0, kind: input, shape index: {}]   ;;  %s3854_s1 = inlined_call_operand.vmem [shape: bf16[688,256], index: 1, kind: input, shape index: {}]   ;;  %s3855_s2 = inlined_call_operand.vmem [shape: f32[456,256], index: 2, kind: input, shape index: {}]   ;;  %s3856_s3 = inlined_call_operand.hbm [shape: f32[2,128], index: 3, kind: output, shape index: {}]  }
   0x1   :  { %v1969_v0 = vld [vmem:[%s3854_s1 + $0x70] sm:$0xf]  ;;  %v2262_v1 = vld [vmem:[%s3854_s1 + $0x74] sm:$0xf0]  ;;  %v1961_v9 = vld [vmem:[%s3854_s1 + $0x60] sm:$0xf] }
   0x2   :  { %v2033_v2 = vld [vmem:[%s3854_s1 + $0xf0] sm:$0xf]  ;;  %v1970_v3 = vor.u32 %v2262_v1, %v1969_v0  ;;  %v2278_v4 = vld [vmem:[%s3854_s1 + $0xf4] sm:$0xf0]  ;;  %v2260_v10 = vld [vmem:[%s3854_s1 + $0x64] sm:$0xf0] }
   0x3   :  { %v2097_v5 = vld [vmem:[%s3854_s1 + $0x170] sm:$0xf]  ;;  %v2294_v6 = vld [vmem:[%s3854_s1 + $0x174] sm:$0xf0]  ;;  %v2034_v7 = vor.u32 %v2278_v4, %v2033_v2  ;;  %v2025_v11 = vld [vmem:[%s3854_s1 + $0xe0] sm:$0xf]  ;;  %v1962_v12 = vor.u32 %v2260_v10, %v1961_v9 }
   0x4   :  { %v2098_v8 = vor.u32 %v2294_v6, %v2097_v5  ;;  %549 = vmatpush.bf16.msra.mxu0 %v1970_v3  ;;  %v2276_v13 = vld [vmem:[%s3854_s1 + $0xe4] sm:$0xf0]  ;;  %v2089_v14 = vld [vmem:[%s3854_s1 + $0x160] sm:$0xf]  ;;  %v1953_v18 = vld [vmem:[%s3854_s1 + $0x50] sm:$0xf] }
   0x5   :  { %v2292_v15 = vld [vmem:[%s3854_s1 + $0x164] sm:$0xf0]  ;;  %598 = vmatpush.bf16.msra.mxu1 %v2034_v7  ;;  %v2026_v16 = vor.u32 %v2276_v13, %v2025_v11  ;;  %v2258_v19 = vld [vmem:[%s3854_s1 + $0x54] sm:$0xf0]  ;;  %v2017_v20 = vld [vmem:[%s3854_s1 + $0xd0] sm:$0xf] }
   0x6   :  { %647 = vmatpush.bf16.msra.mxu2 %v2098_v8  ;;  %v2090_v17 = vor.u32 %v2292_v15, %v2089_v14  ;;  %v2274_v21 = vld [vmem:[%s3854_s1 + $0xd4] sm:$0xf0]  ;;  %v2081_v22 = vld [vmem:[%s3854_s1 + $0x150] sm:$0xf]  ;;  %v2121_v24 = vld [vmem:[%s3854_s1 + $0x1a0] sm:$0xf]  ;;  %v1954_v26 = vor.u32 %v2258_v19, %v1953_v18 }
   0x7   :  { %v2290_v23 = vld [vmem:[%s3854_s1 + $0x154] sm:$0xf0]  ;;  %v2300_v25 = vld [vmem:[%s3854_s1 + $0x1a4] sm:$0xf0]  ;;  %v1945_v28 = vld [vmem:[%s3854_s1 + $0x40] sm:$0xf]  ;;  %v2018_v30 = vor.u32 %v2274_v21, %v2017_v20 }
   0x8   :  { %550 = vmatpush.bf16.msra.mxu0 %v1962_v12  ;;  %v2122_v27 = vor.u32 %v2300_v25, %v2121_v24  ;;  %v2256_v29 = vld [vmem:[%s3854_s1 + $0x44] sm:$0xf0]  ;;  %v2082_v31 = vor.u32 %v2290_v23, %v2081_v22  ;;  %v2009_v32 = vld [vmem:[%s3854_s1 + $0xc0] sm:$0xf]  ;;  %v2113_v34 = vld [vmem:[%s3854_s1 + $0x190] sm:$0xf] }
   0x9   :  { %599 = vmatpush.bf16.msra.mxu1 %v2026_v16  ;;  %v2272_v33 = vld [vmem:[%s3854_s1 + $0xc4] sm:$0xf0]  ;;  %v2073_v35 = vld [vmem:[%s3854_s1 + $0x140] sm:$0xf]  ;;  %v2298_v37 = vld [vmem:[%s3854_s1 + $0x194] sm:$0xf0]  ;;  %v1946_v39 = vor.u32 %v2256_v29, %v1945_v28 }
   0xa   :  { %648 = vmatpush.bf16.msra.mxu2 %v2090_v17  ;;  %701 = vmatpush.bf16.msra.mxu3 %v2122_v27  ;;  %v2288_v36 = vld [vmem:[%s3854_s1 + $0x144] sm:$0xf0]  ;;  %v2114_v38 = vor.u32 %v2298_v37, %v2113_v34  ;;  %v2105_v40 = vld [vmem:[%s3854_s1 + $0x180] sm:$0xf]  ;;  %v2010_v42 = vor.u32 %v2272_v33, %v2009_v32  ;;  %v1937_v44 = vld [vmem:[%s3854_s1 + $0x30] sm:$0xf] }
   0xb   :  { %v2296_v41 = vld [vmem:[%s3854_s1 + $0x184] sm:$0xf0]  ;;  %v2074_v43 = vor.u32 %v2288_v36, %v2073_v35  ;;  %v2254_v45 = vld [vmem:[%s3854_s1 + $0x34] sm:$0xf0]  ;;  %v2001_v46 = vld [vmem:[%s3854_s1 + $0xb0] sm:$0xf] }
   0xc   :  { %551 = vmatpush.bf16.msra.mxu0 %v1954_v26  ;;  %v2270_v47 = vld [vmem:[%s3854_s1 + $0xb4] sm:$0xf0]  ;;  %v2065_v48 = vld [vmem:[%s3854_s1 + $0x130] sm:$0xf]  ;;  %v2106_v50 = vor.u32 %v2296_v41, %v2105_v40  ;;  %v2216_v51 = vld [vmem:[%s3853_s0 + $0xc] sm:$0xf]  ;;  %v1938_v53 = vor.u32 %v2254_v45, %v1937_v44 }
   0xd   :  { %600 = vmatpush.bf16.msra.mxu1 %v2018_v30  ;;  %v2286_v49 = vld [vmem:[%s3854_s1 + $0x134] sm:$0xf0]  ;;  %v1795_v52 = vld [vmem:[%s3853_s0 + $0x18] sm:$0xf0]  ;;  %v1929_v54 = vld [vmem:[%s3854_s1 + $0x20] sm:$0xf]  ;;  %v2002_v56 = vor.u32 %v2270_v47, %v2001_v46 }
   0xe   :  { %649 = vmatpush.bf16.msra.mxu2 %v2082_v31  ;;  %702 = vmatpush.bf16.msra.mxu3 %v2114_v38  ;;  %v2252_v55 = vld [vmem:[%s3854_s1 + $0x24] sm:$0xf0]  ;;  %v2066_v57 = vor.u32 %v2286_v49, %v2065_v48  ;;  %v1993_v58 = vld [vmem:[%s3854_s1 + $0xa0] sm:$0xf]  ;;  %v2537_v61 = vor.u32 %v2216_v51, %v1795_v52  ;;  %v2261_v63 = vld [vmem:[%s3854_s1 + $0x74] sm:$0xf] }
   0xf   :  { %v2268_v59 = vld [vmem:[%s3854_s1 + $0xa4] sm:$0xf0]  ;;  %v2057_v60 = vld [vmem:[%s3854_s1 + $0x120] sm:$0xf]  ;;  %v1971_v0 = vld [vmem:[%s3854_s1 + $0x78] sm:$0xf0]  ;;  %v1930_v2 = vor.u32 %v2252_v55, %v1929_v54 }
  0x10   :  { %552 = vmatpush.bf16.msra.mxu0 %v1946_v39  ;;  %v2284_v62 = vld [vmem:[%s3854_s1 + $0x124] sm:$0xf0]  ;;  %v1974_v1 = vor.u32 %v2261_v63, %v1971_v0  ;;  %v1994_v3 = vor.u32 %v2268_v59, %v1993_v58  ;;  %v1921_v5 = vld [vmem:[%s3854_s1 + $0x10] sm:$0xf]  ;;  %v2250_v6 = vld [vmem:[%s3854_s1 + $0x14] sm:$0xf0] }
  0x11   :  { %601 = vmatpush.bf16.msra.mxu1 %v2010_v42  ;;  %v2058_v4 = vor.u32 %v2284_v62, %v2057_v60  ;;  %v1985_v7 = vld [vmem:[%s3854_s1 + $0x90] sm:$0xf]  ;;  %v2266_v8 = vld [vmem:[%s3854_s1 + $0x94] sm:$0xf0]  ;;  %v1913_v11 = vld [vmem:[%s3854_s1] sm:$0xf]  ;;  %v1922_v13 = vor.u32 %v2250_v6, %v1921_v5 }
  0x12   :  { %650 = vmatpush.bf16.msra.mxu2 %v2074_v43  ;;  %703 = vmatpush.bf16.msra.mxu3 %v2106_v50  ;;  %v2049_v9 = vld [vmem:[%s3854_s1 + $0x110] sm:$0xf]  ;;  %v2282_v10 = vld [vmem:[%s3854_s1 + $0x114] sm:$0xf0]  ;;  %v2248_v12 = vld [vmem:[%s3854_s1 + $0x4] sm:$0xf0]  ;;  %v1986_v17 = vor.u32 %v2266_v8, %v1985_v7 }
  0x13   :  { %v1977_v14 = vld [vmem:[%s3854_s1 + $0x80] sm:$0xf]  ;;  %v2264_v15 = vld [vmem:[%s3854_s1 + $0x84] sm:$0xf0]  ;;  %v2050_v18 = vor.u32 %v2282_v10, %v2049_v9  ;;  %v2259_v20 = vld [vmem:[%s3854_s1 + $0x64] sm:$0xf]  ;;  %v1914_v30 = vor.u32 %v2248_v12, %v1913_v11 }
  0x14   :  { %553 = vmatpush.bf16.msra.mxu0 %v1938_v53  ;;  %v2041_v16 = vld [vmem:[%s3854_s1 + $0x100] sm:$0xf]  ;;  %v2280_v19 = vld [vmem:[%s3854_s1 + $0x104] sm:$0xf0]  ;;  %v1963_v21 = vld [vmem:[%s3854_s1 + $0x68] sm:$0xf0]  ;;  %v1978_v34 = vor.u32 %v2264_v15, %v1977_v14 }
  0x15   :  { %602 = vmatpush.bf16.msra.mxu1 %v2002_v56  ;;  %2127 = vmatmul.msk.bf16.vlgmr.msra.gmra.mxu3 %vm524_vm0, %v2537_v61  ;;  %v1785_v22 = vld [vmem:[%s3853_s0] sm:$0xf]  ;;  %v2217_v23 = vld [vmem:[%s3853_s0 + $0xc] sm:$0xf0]  ;;  %v2299_v24 = vld [vmem:[%s3854_s1 + $0x1a4] sm:$0xf]  ;;  %v1966_v25 = vor.u32 %v2259_v20, %v1963_v21  ;;  %v2042_v35 = vor.u32 %v2280_v19, %v2041_v16 }
  0x16   :  { %651 = vmatpush.bf16.msra.mxu2 %v2066_v57  ;;  %745 = vmatpush.bf16.msrb.mxu3 %v1974_v1  ;;  %v2215_v26 = vld [vmem:[%s3853_s0 + $0x4] sm:$0xf]  ;;  %v2123_v27 = vld [vmem:[%s3854_s1 + $0x1a8] sm:$0xf0]  ;;  %v2277_v28 = vld [vmem:[%s3854_s1 + $0xf4] sm:$0xf]  ;;  %v2640_v44 = vor.u32 %v2217_v23, %v1785_v22 }
  0x17   :  { %v2035_v29 = vld [vmem:[%s3854_s1 + $0xf8] sm:$0xf0]  ;;  %v1787_v31 = vld [vmem:[%s3853_s0 + $0x10] sm:$0xf0]  ;;  %v1793_v36 = vld [vmem:[%s3853_s0 + $0x8] sm:$0xf]  ;;  %v2126_v39 = vor.u32 %v2299_v24, %v2123_v27 }
  0x18   :  { %554 = vmatpush.bf16.msra.mxu0 %v1930_v2  ;;  %v2293_v32 = vld [vmem:[%s3854_s1 + $0x174] sm:$0xf]  ;;  %v2099_v33 = vld [vmem:[%s3854_s1 + $0x178] sm:$0xf0]  ;;  %v2218_v37 = vld [vmem:[%s3853_s0 + $0x14] sm:$0xf0]  ;;  %v2038_v40 = vor.u32 %v2277_v28, %v2035_v29 }
  0x19   :  { %603 = vmatpush.bf16.msra.mxu1 %v1994_v3  ;;  %v2220_v38 = vld [vmem:[%s3853_s0 + $0x2c] sm:$0xf]  ;;  %v1811_v41 = vld [vmem:[%s3853_s0 + $0x38] sm:$0xf0]  ;;  %v2257_v42 = vld [vmem:[%s3854_s1 + $0x54] sm:$0xf]  ;;  %v2102_v45 = vor.u32 %v2293_v32, %v2099_v33 }
  0x1a   :  { %652 = vmatpush.bf16.msra.mxu2 %v2058_v4  ;;  %746 = vmatpush.bf16.msrb.mxu3 %v1966_v25  ;;  %v1955_v43 = vld [vmem:[%s3854_s1 + $0x58] sm:$0xf0]  ;;  %v2275_v46 = vld [vmem:[%s3854_s1 + $0xe4] sm:$0xf]  ;;  %v2027_v47 = vld [vmem:[%s3854_s1 + $0xe8] sm:$0xf0] }
  0x1c   :  { %555 = vmatpush.bf16.msra.mxu0 %v1922_v13 }
  0x1d   :  { %604 = vmatpush.bf16.msra.mxu1 %v1986_v17 }
  0x1e   :  { %653 = vmatpush.bf16.msra.mxu2 %v2050_v18 }
  0x1f   :  { %8 = vsyncpa [#allocation3], 0  ;;  %v2648_v48 = vor.u32 %v2215_v26, %v1787_v31  ;;  %v2650_v49 = vor.u32 %v2218_v37, %v1793_v36  ;;  %v2291_v50 = vld [vmem:[%s3854_s1 + $0x164] sm:$0xf]  ;;  %v2091_v51 = vld [vmem:[%s3854_s1 + $0x168] sm:$0xf0]  ;;  %v1958_v52 = vor.u32 %v2257_v42, %v1955_v43  ;;  %v2658_v53 = vor.u32 %v2220_v38, %v1811_v41 }
  0x20   :  { %556 = vmatpush.bf16.msra.mxu0 %v1914_v30  ;;  %v2030_v54 = vor.u32 %v2275_v46, %v2027_v47  ;;  %v2094_v55 = vor.u32 %v2291_v50, %v2091_v51  ;;  %v2273_v56 = vld [vmem:[%s3854_s1 + $0xd4] sm:$0xf]  ;;  %v2019_v57 = vld [vmem:[%s3854_s1 + $0xd8] sm:$0xf0]  ;;  %v2255_v1 = vld [vmem:[%s3854_s1 + $0x44] sm:$0xf] }
  0x21   :  { %605 = vmatpush.bf16.msra.mxu1 %v1978_v34  ;;  %747 = vmatpush.bf16.msrb.mxu3 %v1958_v52  ;;  %v2022_v58 = vor.u32 %v2273_v56, %v2019_v57  ;;  %v2289_v59 = vld [vmem:[%s3854_s1 + $0x154] sm:$0xf]  ;;  %v2083_v60 = vld [vmem:[%s3854_s1 + $0x158] sm:$0xf0]  ;;  %v1947_v2 = vld [vmem:[%s3854_s1 + $0x48] sm:$0xf0] }
  0x22   :  { %654 = vmatpush.bf16.msra.mxu2 %v2042_v35  ;;  %v2297_v62 = vld [vmem:[%s3854_s1 + $0x194] sm:$0xf]  ;;  %v2086_v63 = vor.u32 %v2289_v59, %v2083_v60  ;;  %v2115_v0 = vld [vmem:[%s3854_s1 + $0x198] sm:$0xf0]  ;;  %v1950_v4 = vor.u32 %v2255_v1, %v1947_v2  ;;  %v1801_v5 = vld [vmem:[%s3853_s0 + $0x20] sm:$0xf] }
  0x23   :  { %557 = vmatmul.bf16.vlgmr.msra.gmra.mxu0 %v2640_v44  ;;  %v2118_v3 = vor.u32 %v2297_v62, %v2115_v0  ;;  %v2221_v6 = vld [vmem:[%s3853_s0 + $0x2c] sm:$0xf0]  ;;  %v2219_v7 = vld [vmem:[%s3853_s0 + $0x24] sm:$0xf]  ;;  %v1803_v8 = vld [vmem:[%s3853_s0 + $0x30] sm:$0xf0] }
  0x24   :  { %794 = vmatpush.bf16.msrb.mxu0 %v2038_v40  ;;  %606 = vmatmul.bf16.vlgmr.msra.gmra.mxu1 %v2648_v48  ;;  %v1809_v9 = vld [vmem:[%s3853_s0 + $0x28] sm:$0xf]  ;;  %v2222_v10 = vld [vmem:[%s3853_s0 + $0x34] sm:$0xf0]  ;;  %v2707_v11 = vor.u32 %v2221_v6, %v1801_v5  ;;  %v2224_v12 = vld [vmem:[%s3853_s0 + $0x4c] sm:$0xf]  ;;  %v2715_v14 = vor.u32 %v2219_v7, %v1803_v8 }
  0x25   :  { %843 = vmatpush.bf16.msrb.mxu1 %v2102_v45  ;;  %655 = vmatmul.bf16.vlgmr.msra.gmra.mxu2 %v2650_v49  ;;  %v1827_v13 = vld [vmem:[%s3853_s0 + $0x58] sm:$0xf0]  ;;  %v2717_v15 = vor.u32 %v2222_v10, %v1809_v9  ;;  %v2271_v17 = vld [vmem:[%s3854_s1 + $0xc4] sm:$0xf]  ;;  %v2011_v18 = vld [vmem:[%s3854_s1 + $0xc8] sm:$0xf0] }
  0x26   :  { %897 = vmatpush.bf16.msrb.mxu2 %v2126_v39  ;;  %2128 = vmatmul.msk.bf16.gmra.mxu3 %vm524_vm0, %v2658_v53  ;;  %v2719_v16 = vor.u32 %v2224_v12, %v1827_v13  ;;  %v2014_v19 = vor.u32 %v2271_v17, %v2011_v18  ;;  %v2287_v20 = vld [vmem:[%s3854_s1 + $0x144] sm:$0xf]  ;;  %v2075_v21 = vld [vmem:[%s3854_s1 + $0x148] sm:$0xf0]  ;;  %v2253_v22 = vld [vmem:[%s3854_s1 + $0x34] sm:$0xf] }
  0x27   :  { %748 = vmatpush.bf16.msrb.mxu3 %v1950_v4  ;;  %v2078_v23 = vor.u32 %v2287_v20, %v2075_v21  ;;  %v1939_v24 = vld [vmem:[%s3854_s1 + $0x38] sm:$0xf0]  ;;  %v1817_v26 = vld [vmem:[%s3853_s0 + $0x40] sm:$0xf]  ;;  %v2225_v27 = vld [vmem:[%s3853_s0 + $0x4c] sm:$0xf0] }
  0x28   :  { %795 = vmatpush.bf16.msrb.mxu0 %v2030_v54  ;;  %v1942_v25 = vor.u32 %v2253_v22, %v1939_v24  ;;  %v2223_v28 = vld [vmem:[%s3853_s0 + $0x44] sm:$0xf]  ;;  %v1819_v29 = vld [vmem:[%s3853_s0 + $0x50] sm:$0xf0]  ;;  %v1825_v30 = vld [vmem:[%s3853_s0 + $0x48] sm:$0xf]  ;;  %v2762_v32 = vor.u32 %v2225_v27, %v1817_v26 }
  0x29   :  { %844 = vmatpush.bf16.msrb.mxu1 %v2094_v55  ;;  %v2226_v31 = vld [vmem:[%s3853_s0 + $0x54] sm:$0xf0]  ;;  %v2228_v33 = vld [vmem:[%s3853_s0 + $0x6c] sm:$0xf]  ;;  %v1843_v34 = vld [vmem:[%s3853_s0 + $0x78] sm:$0xf0]  ;;  %v2770_v35 = vor.u32 %v2223_v28, %v1819_v29 }
  0x2a   :  { %898 = vmatpush.bf16.msrb.mxu2 %v2118_v3  ;;  %v2772_v36 = vor.u32 %v2226_v31, %v1825_v30  ;;  %v2774_v37 = vor.u32 %v2228_v33, %v1843_v34  ;;  %v2269_v38 = vld [vmem:[%s3854_s1 + $0xb4] sm:$0xf]  ;;  %v2003_v39 = vld [vmem:[%s3854_s1 + $0xb8] sm:$0xf0]  ;;  %v2251_v43 = vld [vmem:[%s3854_s1 + $0x24] sm:$0xf] }
  0x2b   :  { %749 = vmatpush.bf16.msrb.mxu3 %v1942_v25  ;;  %v2006_v40 = vor.u32 %v2269_v38, %v2003_v39  ;;  %v2285_v41 = vld [vmem:[%s3854_s1 + $0x134] sm:$0xf]  ;;  %v2067_v42 = vld [vmem:[%s3854_s1 + $0x138] sm:$0xf0]  ;;  %v1931_v46 = vld [vmem:[%s3854_s1 + $0x28] sm:$0xf0] }
  0x2c   :  { %796 = vmatpush.bf16.msrb.mxu0 %v2022_v58  ;;  %v2070_v45 = vor.u32 %v2285_v41, %v2067_v42  ;;  %v1934_v47 = vor.u32 %v2251_v43, %v1931_v46  ;;  %v1833_v50 = vld [vmem:[%s3853_s0 + $0x60] sm:$0xf]  ;;  %v2229_v51 = vld [vmem:[%s3853_s0 + $0x6c] sm:$0xf0]  ;;  %v2227_v52 = vld [vmem:[%s3853_s0 + $0x64] sm:$0xf] }
  0x2d   :  { %845 = vmatpush.bf16.msrb.mxu1 %v2086_v63  ;;  %v1835_v54 = vld [vmem:[%s3853_s0 + $0x70] sm:$0xf0]  ;;  %v1841_v55 = vld [vmem:[%s3853_s0 + $0x68] sm:$0xf]  ;;  %v2230_v56 = vld [vmem:[%s3853_s0 + $0x74] sm:$0xf0]  ;;  %v2817_v57 = vor.u32 %v2229_v51, %v1833_v50 }
  0x2e   :  { %v2232_v58 = vld [vmem:[%s3853_s0 + $0x8c] sm:$0xf]  ;;  %v1859_v59 = vld [vmem:[%s3853_s0 + $0x98] sm:$0xf0]  ;;  %v2825_v60 = vor.u32 %v2227_v52, %v1835_v54  ;;  %v2827_v62 = vor.u32 %v2230_v56, %v1841_v55  ;;  %v2267_v0 = vld [vmem:[%s3854_s1 + $0xa4] sm:$0xf] }
  0x2f   :  { %750 = vmatpush.bf16.msrb.mxu3 %v1934_v47  ;;  %v2829_v63 = vor.u32 %v2232_v58, %v1859_v59  ;;  %v1995_v1 = vld [vmem:[%s3854_s1 + $0xa8] sm:$0xf0]  ;;  %v2283_v3 = vld [vmem:[%s3854_s1 + $0x124] sm:$0xf]  ;;  %v2249_v8 = vld [vmem:[%s3854_s1 + $0x14] sm:$0xf] }
  0x30   :  { %797 = vmatpush.bf16.msrb.mxu0 %v2014_v19  ;;  %v1998_v2 = vor.u32 %v2267_v0, %v1995_v1  ;;  %v2059_v4 = vld [vmem:[%s3854_s1 + $0x128] sm:$0xf0]  ;;  %v2295_v5 = vld [vmem:[%s3854_s1 + $0x184] sm:$0xf]  ;;  %v1923_v9 = vld [vmem:[%s3854_s1 + $0x18] sm:$0xf0] }
  0x31   :  { %846 = vmatpush.bf16.msrb.mxu1 %v2078_v23  ;;  %v2062_v6 = vor.u32 %v2283_v3, %v2059_v4  ;;  %v2107_v7 = vld [vmem:[%s3854_s1 + $0x188] sm:$0xf0]  ;;  %v1926_v12 = vor.u32 %v2249_v8, %v1923_v9  ;;  %v1849_v13 = vld [vmem:[%s3853_s0 + $0x80] sm:$0xf]  ;;  %v2233_v17 = vld [vmem:[%s3853_s0 + $0x8c] sm:$0xf0] }
  0x32   :  { %v2110_v10 = vor.u32 %v2295_v5, %v2107_v7  ;;  %v2231_v18 = vld [vmem:[%s3853_s0 + $0x84] sm:$0xf]  ;;  %v1851_v19 = vld [vmem:[%s3853_s0 + $0x90] sm:$0xf0]  ;;  %v1857_v20 = vld [vmem:[%s3853_s0 + $0x88] sm:$0xf]  ;;  %v2878_v22 = vor.u32 %v2233_v17, %v1849_v13 }
  0x33   :  { %562 = vmatmul.bf16.gmra.mxu0 %v2707_v11  ;;  %751 = vmatpush.bf16.msrb.mxu3 %v1926_v12  ;;  %v2234_v21 = vld [vmem:[%s3853_s0 + $0x94] sm:$0xf0]  ;;  %v2236_v23 = vld [vmem:[%s3853_s0 + $0xac] sm:$0xf]  ;;  %v1875_v24 = vld [vmem:[%s3853_s0 + $0xb8] sm:$0xf0]  ;;  %v2886_v25 = vor.u32 %v2231_v18, %v1851_v19 }
  0x34   :  { %611 = vmatmul.bf16.gmra.mxu1 %v2715_v14  ;;  %798 = vmatpush.bf16.msrb.mxu0 %v2006_v40  ;;  %v2888_v26 = vor.u32 %v2234_v21, %v1857_v20  ;;  %v2890_v27 = vor.u32 %v2236_v23, %v1875_v24  ;;  %v2265_v28 = vld [vmem:[%s3854_s1 + $0x94] sm:$0xf]  ;;  %v1987_v29 = vld [vmem:[%s3854_s1 + $0x98] sm:$0xf0]  ;;  %v2247_v34 = vld [vmem:[%s3854_s1 + $0x4] sm:$0xf] }
  0x35   :  { %660 = vmatmul.bf16.gmra.mxu2 %v2717_v15  ;;  %847 = vmatpush.bf16.msrb.mxu1 %v2070_v45  ;;  %v1990_v30 = vor.u32 %v2265_v28, %v1987_v29  ;;  %v2281_v31 = vld [vmem:[%s3854_s1 + $0x114] sm:$0xf]  ;;  %v2051_v33 = vld [vmem:[%s3854_s1 + $0x118] sm:$0xf0]  ;;  %v1915_v39 = vld [vmem:[%s3854_s1 + $0x8] sm:$0xf0] }
  0x36   :  { %2129 = vmatmul.msk.bf16.gmra.mxu3 %vm524_vm0, %v2719_v16  ;;  %899 = vmatpush.bf16.msrb.mxu2 %v2110_v10  ;;  %v2054_v38 = vor.u32 %v2281_v31, %v2051_v33  ;;  %v1918_v40 = vor.u32 %v2247_v34, %v1915_v39  ;;  %v1865_v41 = vld [vmem:[%s3853_s0 + $0xa0] sm:$0xf]  ;;  %v2237_v42 = vld [vmem:[%s3853_s0 + $0xac] sm:$0xf0]  ;;  %v2235_v43 = vld [vmem:[%s3853_s0 + $0xa4] sm:$0xf] }
  0x37   :  { %v1867_v45 = vld [vmem:[%s3853_s0 + $0xb0] sm:$0xf0]  ;;  %v1873_v46 = vld [vmem:[%s3853_s0 + $0xa8] sm:$0xf]  ;;  %v2238_v47 = vld [vmem:[%s3853_s0 + $0xb4] sm:$0xf0]  ;;  %v2933_v50 = vor.u32 %v2237_v42, %v1865_v41 }
  0x38   :  { %799 = vmatpush.bf16.msrb.mxu0 %v1998_v2  ;;  %752 = vmatpush.bf16.msrb.mxu3 %v1918_v40  ;;  %v2240_v51 = vld [vmem:[%s3853_s0 + $0xcc] sm:$0xf]  ;;  %v1891_v52 = vld [vmem:[%s3853_s0 + $0xd8] sm:$0xf0]  ;;  %v2941_v54 = vor.u32 %v2235_v43, %v1867_v45  ;;  %v2943_v55 = vor.u32 %v2238_v47, %v1873_v46  ;;  %v2263_v58 = vld [vmem:[%s3854_s1 + $0x84] sm:$0xf] }
  0x39   :  { %848 = vmatpush.bf16.msrb.mxu1 %v2062_v6  ;;  %v2945_v56 = vor.u32 %v2240_v51, %v1891_v52  ;;  %v1979_v59 = vld [vmem:[%s3854_s1 + $0x88] sm:$0xf0]  ;;  %v2279_v1 = vld [vmem:[%s3854_s1 + $0x104] sm:$0xf]  ;;  %v1881_v4 = vld [vmem:[%s3853_s0 + $0xc0] sm:$0xf] }
  0x3a   :  { %v1982_v0 = vor.u32 %v2263_v58, %v1979_v59  ;;  %v2043_v2 = vld [vmem:[%s3854_s1 + $0x108] sm:$0xf0]  ;;  %v2241_v5 = vld [vmem:[%s3853_s0 + $0xcc] sm:$0xf0]  ;;  %v2239_v6 = vld [vmem:[%s3853_s0 + $0xc4] sm:$0xf] }
  0x3b   :  { %v2046_v3 = vor.u32 %v2279_v1, %v2043_v2  ;;  %v1883_v7 = vld [vmem:[%s3853_s0 + $0xd0] sm:$0xf0]  ;;  %v1889_v8 = vld [vmem:[%s3853_s0 + $0xc8] sm:$0xf]  ;;  %v2242_v9 = vld [vmem:[%s3853_s0 + $0xd4] sm:$0xf0]  ;;  %v2982_v10 = vor.u32 %v2241_v5, %v1881_v4 }
  0x3c   :  { %800 = vmatpush.bf16.msrb.mxu0 %v1990_v30  ;;  %v2244_v12 = vld [vmem:[%s3853_s0 + $0xec] sm:$0xf]  ;;  %v1907_v13 = vld [vmem:[%s3853_s0 + $0xf8] sm:$0xf0]  ;;  %v2990_v17 = vor.u32 %v2239_v6, %v1883_v7  ;;  %v2992_v18 = vor.u32 %v2242_v9, %v1889_v8  ;;  %v1897_v20 = vld [vmem:[%s3853_s0 + $0xe0] sm:$0xf] }
  0x3d   :  { %849 = vmatpush.bf16.msrb.mxu1 %v2054_v38  ;;  %v2994_v19 = vor.u32 %v2244_v12, %v1907_v13  ;;  %v2245_v21 = vld [vmem:[%s3853_s0 + $0xec] sm:$0xf0]  ;;  %v2243_v23 = vld [vmem:[%s3853_s0 + $0xe4] sm:$0xf]  ;;  %v1899_v24 = vld [vmem:[%s3853_s0 + $0xf0] sm:$0xf0] }
  0x3e   :  { %v1905_v28 = vld [vmem:[%s3853_s0 + $0xe8] sm:$0xf]  ;;  %v2246_v29 = vld [vmem:[%s3853_s0 + $0xf4] sm:$0xf0]  ;;  %v3019_v30 = vor.u32 %v2245_v21, %v1897_v20  ;;  %v3021_v31 = vor.u32 %v2243_v23, %v1899_v24  ;;  %s2385_s11 = smov 64   ;;  %s2386_s12 = smov 32  }
  0x3f   :  { %v3023_v33 = vor.u32 %v2246_v29, %v1905_v28  ;;  %vm1426_vm11 = vcmask 261120   ;;  %s2387_s26 = smov [#allocation2]   ;;  %s1774_s30 = sshll.u32 %s3856_s3, 4  ;;  %s1775_s30 = int_to_ptr.hbm [resolvable:$true] %s1774_s30 }
  0x40   :  { %801 = vmatpush.bf16.msrb.mxu0 %v1982_v0  ;;  %s1772_s27 = sshll.u32 %s2387_s26, 4  ;;  %s1773_s27 = int_to_ptr.vmem [resolvable:$true] %s1772_s27 }
  0x41   :  { %850 = vmatpush.bf16.msrb.mxu1 %v2046_v3 }
  0x43   :  { %567 = vmatmul.bf16.gmra.mxu0 %v2762_v32 }
  0x44   :  { %616 = vmatmul.bf16.gmra.mxu1 %v2770_v35 }
  0x45   :  { %665 = vmatmul.bf16.gmra.mxu2 %v2772_v36 }
  0x46   :  { %2130 = vmatmul.msk.bf16.gmra.mxu3 %vm524_vm0, %v2774_v37 }
  0x53   :  { %572 = vmatmul.bf16.gmra.mxu0 %v2817_v57 }
  0x54   :  { %621 = vmatmul.bf16.gmra.mxu1 %v2825_v60 }
  0x55   :  { %670 = vmatmul.bf16.gmra.mxu2 %v2827_v62 }
  0x56   :  { %2131 = vmatmul.msk.bf16.gmra.mxu3 %vm524_vm0, %v2829_v63 }
  0x63   :  { %577 = vmatmul.bf16.gmra.mxu0 %v2878_v22 }
  0x64   :  { %626 = vmatmul.bf16.gmra.mxu1 %v2886_v25 }
  0x65   :  { %675 = vmatmul.bf16.gmra.mxu2 %v2888_v26 }
  0x66   :  { %2132 = vmatmul.msk.bf16.gmra.mxu3 %vm524_vm0, %v2890_v27 }
  0x73   :  { %582 = vmatmul.bf16.gmra.mxu0 %v2933_v50 }
  0x74   :  { %631 = vmatmul.bf16.gmra.mxu1 %v2941_v54 }
  0x75   :  { %680 = vmatmul.bf16.gmra.mxu2 %v2943_v55 }
  0x76   :  { %2133 = vmatmul.msk.bf16.gmra.mxu3 %vm524_vm0, %v2945_v56 }
  0x83   :  { %587 = vmatmul.bf16.gmra.mxu0 %v2982_v10 }
  0x84   :  { %636 = vmatmul.bf16.gmra.mxu1 %v2990_v17 }
  0x85   :  { %685 = vmatmul.bf16.gmra.mxu2 %v2992_v18 }
  0x86   :  { %2134 = vmatmul.msk.bf16.gmra.mxu3 %vm524_vm0, %v2994_v19 }
  0x93   :  { %592 = vmatmul.bf16.gmra.mxu0 %v3019_v30 }
  0x94   :  { %641 = vmatmul.bf16.gmra.mxu1 %v3021_v31 }
  0x95   :  { %690 = vmatmul.bf16.gmra.mxu2 %v3023_v33 }
  0x96   :  { %753 = vmatmul.bf16.vlgmr.msrb.gmra.mxu3 %v2640_v44 }
  0x98   :  { %v705_v34 = vpop.f32.mrf.mxu3 }
  0xa0   :  { %v558_v38 = vpop.f32.mrf.mxu0  ;;  %v707_v40 = vpop.f32.mrf.mxu3 }
  0xa1   :  { %v607_v39 = vpop.f32.mrf.mxu1 }
  0xa2   :  { %v608_v41 = vadd.f32 %v607_v39, %v558_v38 }
  0xa3   :  { %802 = vmatmul.bf16.vlgmr.msrb.gmra.mxu0 %v2648_v48 }
  0xa4   :  { %851 = vmatmul.bf16.vlgmr.msrb.gmra.mxu1 %v2650_v49 }
  0xa5   :  { %2135 = vmatmul.msk.bf16.vlgmr.msrb.gmra.mxu2 %vm524_vm0, %v2537_v61 }
  0xa6   :  { %758 = vmatmul.bf16.gmra.mxu3 %v2707_v11 }
  0xa8   :  { %v656_v42 = vpop.f32.mrf.mxu2  ;;  %v560_v45 = vpop.f32.mrf.mxu0 }
  0xa9   :  { %v657_v43 = vadd.f32 %v656_v42, %v608_v41  ;;  %v609_v46 = vpop.f32.mrf.mxu1  ;;  %v710_v47 = vpop.f32.mrf.mxu3 }
  0xaa   :  { %v610_v51 = vadd.f32 %v609_v46, %v560_v45 }
  0xab   :  { %v706_v44 = vadd.f32 %v705_v34, %v657_v43 }
  0xb0   :  { %v658_v52 = vpop.f32.mrf.mxu2  ;;  %v563_v59 = vpop.f32.mrf.mxu0 }
  0xb1   :  { %v659_v58 = vadd.f32 %v658_v52, %v610_v51  ;;  %v612_v0 = vpop.f32.mrf.mxu1  ;;  %v712_v1 = vpop.f32.mrf.mxu3 }
  0xb2   :  { %v613_v2 = vadd.f32 %v612_v0, %v563_v59 }
  0xb3   :  { %v708_v48 = vadd.f32 %v707_v40, %v659_v58  ;;  %807 = vmatmul.bf16.gmra.mxu0 %v2715_v14 }
  0xb4   :  { %856 = vmatmul.bf16.gmra.mxu1 %v2717_v15 }
  0xb5   :  { %v941_v49 = vmax.f32 %v706_v44, %v708_v48  ;;  %2136 = vmatmul.msk.bf16.gmra.mxu2 %vm524_vm0, %v2658_v53 }
  0xb6   :  { %763 = vmatmul.bf16.gmra.mxu3 %v2762_v32 }
  0xb8   :  { %v661_v61 = vpop.f32.mrf.mxu2  ;;  %v565_v3 = vpop.f32.mrf.mxu0 }
  0xb9   :  { %v662_v11 = vadd.f32 %v661_v61, %v613_v2  ;;  %v614_v4 = vpop.f32.mrf.mxu1  ;;  %v715_v5 = vpop.f32.mrf.mxu3 }
  0xba   :  { %v615_v7 = vadd.f32 %v614_v4, %v565_v3 }
  0xbb   :  { %v711_v6 = vadd.f32 %v710_v47, %v662_v11 }
  0xc0   :  { %v663_v8 = vpop.f32.mrf.mxu2  ;;  %v568_v12 = vpop.f32.mrf.mxu0 }
  0xc1   :  { %v664_v9 = vadd.f32 %v663_v8, %v615_v7  ;;  %v617_v13 = vpop.f32.mrf.mxu1  ;;  %v717_v14 = vpop.f32.mrf.mxu3  ;;  %v3100_v7 = vld [vmem:[%s3855_s2 + $0x280] sm:$0xff] }
  0xc2   :  { %v618_v21 = vadd.f32 %v617_v13, %v568_v12  ;;  %1055 = vmatpush.msra.mxu3 %v3100_v7  ;;  %v3133_v12 = vld [vmem:[%s3855_s2 + $0x268] sm:$0xff] }
  0xc3   :  { %v713_v20 = vadd.f32 %v712_v1, %v664_v9  ;;  %812 = vmatmul.bf16.gmra.mxu0 %v2770_v35  ;;  %v3128_v9 = vld [vmem:[%s3855_s2 + $0x260] sm:$0xff] }
  0xc4   :  { %861 = vmatmul.bf16.gmra.mxu1 %v2772_v36 }
  0xc5   :  { %v943_v15 = vmax.f32 %v711_v6, %v713_v20  ;;  %2137 = vmatmul.msk.bf16.gmra.mxu2 %vm524_vm0, %v2719_v16  ;;  %v3144_v20 = vld [vmem:[%s3855_s2 + $0x250] sm:$0xff] }
  0xc6   :  { %768 = vmatmul.bf16.gmra.mxu3 %v2817_v57 }
  0xc7   :  { %v3043_v53 = vmax.f32 %v941_v49, %v943_v15  ;;  %v3159_v15 = vld [vmem:[%s3855_s2 + $0x240] sm:$0xff] }
  0xc8   :  { %v666_v32 = vpop.f32.mrf.mxu2  ;;  %v570_v24 = vpop.f32.mrf.mxu0 }
  0xc9   :  { %v667_v23 = vadd.f32 %v666_v32, %v618_v21  ;;  %v619_v28 = vpop.f32.mrf.mxu1  ;;  %v720_v29 = vpop.f32.mrf.mxu3  ;;  %v3149_v21 = vld [vmem:[%s3855_s2 + $0x258] sm:$0xff]  ;;  %v3164_v32 = vld [vmem:[%s3855_s2 + $0x248] sm:$0xff] }
  0xca   :  { %v620_v38 = vadd.f32 %v619_v28, %v570_v24  ;;  %v3191_v24 = vld [vmem:[%s3855_s2 + $0x228] sm:$0xff] }
  0xcb   :  { %v716_v34 = vadd.f32 %v715_v5, %v667_v23 }
  0xd0   :  { %v668_v39 = vpop.f32.mrf.mxu2  ;;  %v573_v35 = vpop.f32.mrf.mxu0 }
  0xd1   :  { %v669_v40 = vadd.f32 %v668_v39, %v620_v38  ;;  %v622_v41 = vpop.f32.mrf.mxu1  ;;  %v722_v42 = vpop.f32.mrf.mxu3  ;;  %v3205_v38 = vld [vmem:[%s3855_s2 + $0x218] sm:$0xff]  ;;  %v3212_v39 = vld [vmem:[%s3855_s2 + $0x200] sm:$0xff] }
  0xd2   :  { %v623_v43 = vadd.f32 %v622_v41, %v573_v35  ;;  %v3224_v35 = vld [vmem:[%s3855_s2 + $0x1f0] sm:$0xff]  ;;  %v3229_v41 = vld [vmem:[%s3855_s2 + $0x1f8] sm:$0xff] }
  0xd3   :  { %v718_v36 = vadd.f32 %v717_v14, %v669_v40  ;;  %817 = vmatmul.bf16.gmra.mxu0 %v2825_v60  ;;  %v3217_v40 = vld [vmem:[%s3855_s2 + $0x208] sm:$0xff] }
  0xd4   :  { %866 = vmatmul.bf16.gmra.mxu1 %v2827_v62 }
  0xd5   :  { %v945_v16 = vmax.f32 %v716_v34, %v718_v36  ;;  %2138 = vmatmul.msk.bf16.gmra.mxu2 %vm524_vm0, %v2774_v37  ;;  %v3200_v34 = vld [vmem:[%s3855_s2 + $0x210] sm:$0xff] }
  0xd6   :  { %773 = vmatmul.bf16.gmra.mxu3 %v2878_v22 }
  0xd8   :  { %v671_v57 = vpop.f32.mrf.mxu2  ;;  %v575_v46 = vpop.f32.mrf.mxu0 }
  0xd9   :  { %v672_v45 = vadd.f32 %v671_v57, %v623_v43  ;;  %v624_v47 = vpop.f32.mrf.mxu1  ;;  %v3051_v44 = vpop.f32.mrf.mxu3  ;;  %v3236_v43 = vld [vmem:[%s3855_s2 + $0x1e0] sm:$0xff] }
  0xda   :  { %v625_v52 = vadd.f32 %v624_v47, %v575_v46  ;;  %v3250_v46 = vld [vmem:[%s3855_s2 + $0x1d0] sm:$0xff]  ;;  %v3255_v47 = vld [vmem:[%s3855_s2 + $0x1d8] sm:$0xff] }
  0xdb   :  { %v721_v51 = vadd.f32 %v720_v29, %v672_v45  ;;  %3870 = vst [vmem:[#allocation5_spill] sm:$0xff] %v3250_v46 }
  0xdc   :  { %3871 = vst [vmem:[#allocation6_spill] sm:$0xff] %v3255_v47 }
  0xe0   :  { %v673_v58 = vpop.f32.mrf.mxu2  ;;  %v3053_v0 = vpop.f32.mrf.mxu0 }
  0xe1   :  { %v674_v59 = vadd.f32 %v673_v58, %v625_v52  ;;  %v3055_v60 = vpop.f32.mrf.mxu1  ;;  %v3057_v62 = vpop.f32.mrf.mxu3  ;;  %v3270_v52 = vld [vmem:[%s3855_s2 + $0x1c8] sm:$0xff] }
  0xe2   :  { %3873 = vst [vmem:[#allocation8_spill] sm:$0xff] %v3270_v52 }
  0xe3   :  { %v723_v1 = vadd.f32 %v722_v42, %v674_v59  ;;  %822 = vmatmul.bf16.gmra.mxu0 %v2886_v25 }
  0xe4   :  { %871 = vmatmul.bf16.gmra.mxu1 %v2888_v26 }
  0xe5   :  { %v947_v37 = vmax.f32 %v721_v51, %v723_v1  ;;  %2139 = vmatmul.msk.bf16.gmra.mxu2 %vm524_vm0, %v2829_v63  ;;  %v3265_v51 = vld [vmem:[%s3855_s2 + $0x1c0] sm:$0xff] }
  0xe6   :  { %778 = vmatmul.bf16.gmra.mxu3 %v2933_v50  ;;  %3872 = vst [vmem:[#allocation7_spill] sm:$0xff] %v3265_v51  ;;  %v3291_v1 = vld [vmem:[%s3855_s2 + $0x1a0] sm:$0xff] }
  0xe7   :  { %v3063_v22 = vmax.f32 %v945_v16, %v947_v37  ;;  %v3241_v16 = vld [vmem:[%s3855_s2 + $0x1e8] sm:$0xff] }
  0xe8   :  { %v3066_v48 = vpop.f32.mrf.mxu2  ;;  %v3070_v49 = vpop.f32.mrf.mxu0  ;;  %v3296_v37 = vld [vmem:[%s3855_s2 + $0x1a8] sm:$0xff] }
  0xe9   :  { %v3072_v61 = vpop.f32.mrf.mxu1  ;;  %v3074_v25 = vpop.f32.mrf.mxu3 }
  0xea   :  { %v630_v2 = vadd.f32 %v3072_v61, %v3070_v49  ;;  %v3313_v49 = vld [vmem:[%s3855_s2 + $0x198] sm:$0xff]  ;;  %v628_v61 = vadd.f32 %v3055_v60, %v3053_v0  ;;  %v3332_v0 = vld [vmem:[%s3855_s2 + $0x388] sm:$0xff] }
  0xeb   :  { %1115 = vmatpush.msra.mxu2 %v3332_v0 }
  0xec   :  { %v677_v60 = vadd.f32 %v3066_v48, %v628_v61 }
  0xf0   :  { %v3076_v11 = vpop.f32.mrf.mxu2  ;;  %v3078_v26 = vpop.f32.mrf.mxu0 }
  0xf1   :  { %v3080_v63 = vpop.f32.mrf.mxu1  ;;  %v3082_v3 = vpop.f32.mrf.mxu3 }
  0xf3   :  { %827 = vmatmul.bf16.gmra.mxu0 %v2941_v54  ;;  %v3105_v54 = vld [vmem:[%s3855_s2 + $0x288] sm:$0xff] }
  0xf4   :  { %876 = vmatmul.bf16.gmra.mxu1 %v2943_v55  ;;  %v3117_v55 = vld [vmem:[%s3855_s2 + $0x278] sm:$0xff] }
  0xf5   :  { %2140 = vmatmul.msk.bf16.gmra.mxu2 %vm524_vm0, %v2890_v27  ;;  %1095 = vmatpush.msra.mxu1 %v3105_v54  ;;  %v3112_v27 = vld [vmem:[%s3855_s2 + $0x270] sm:$0xff] }
  0xf6   :  { %783 = vmatmul.bf16.gmra.mxu3 %v2982_v10 }
  0xf7   :  { %1056 = vmatpush.msra.mxu3 %v3112_v27  ;;  %1096 = vmatpush.msra.mxu1 %v3117_v55 }
  0xf8   :  { %v3089_v50 = vpop.f32.mrf.mxu2  ;;  %v3091_v4 = vpop.f32.mrf.mxu0 }
  0xf9   :  { %v3093_v5 = vpop.f32.mrf.mxu1  ;;  %v3095_v6 = vpop.f32.mrf.mxu3  ;;  %1057 = vmatpush.msra.mxu3 %v3128_v9  ;;  %1097 = vmatpush.msra.mxu1 %v3133_v12 }
  0xfb   :  { %1058 = vmatpush.msra.mxu3 %v3144_v20  ;;  %1098 = vmatpush.msra.mxu1 %v3149_v21 }
  0xfd   :  { %1059 = vmatpush.msra.mxu3 %v3159_v15  ;;  %1099 = vmatpush.msra.mxu1 %v3164_v32 }
 0x100   :  { %v3119_v10 = vpop.f32.mrf.mxu2  ;;  %v3123_v8 = vpop.f32.mrf.mxu0 }
 0x101   :  { %v3135_v13 = vpop.f32.mrf.mxu1  ;;  %v3137_v14 = vpop.f32.mrf.mxu3 }
 0x103   :  { %832 = vmatmul.bf16.gmra.mxu0 %v2990_v17  ;;  %v3177_v17 = vld [vmem:[%s3855_s2 + $0x238] sm:$0xff] }
 0x104   :  { %881 = vmatmul.bf16.gmra.mxu1 %v2992_v18 }
 0x105   :  { %2141 = vmatmul.msk.bf16.gmra.mxu2 %vm524_vm0, %v2945_v56  ;;  %v3172_v56 = vld [vmem:[%s3855_s2 + $0x230] sm:$0xff]  ;;  %1100 = vmatpush.msra.mxu1 %v3177_v17 }
 0x106   :  { %788 = vmatmul.bf16.gmra.mxu3 %v3019_v30  ;;  %v3186_v30 = vld [vmem:[%s3855_s2 + $0x220] sm:$0xff] }
 0x107   :  { %1060 = vmatpush.msra.mxu3 %v3172_v56  ;;  %1101 = vmatpush.msra.mxu1 %v3191_v24 }
 0x108   :  { %v3179_v18 = vpop.f32.mrf.mxu2  ;;  %v590_v23 = vpop.f32.mrf.mxu0 }
 0x109   :  { %v639_v28 = vpop.f32.mrf.mxu1  ;;  %v3193_v29 = vpop.f32.mrf.mxu3  ;;  %1061 = vmatpush.msra.mxu3 %v3186_v30  ;;  %1102 = vmatpush.msra.mxu1 %v3205_v38 }
 0x10b   :  { %1062 = vmatpush.msra.mxu3 %v3200_v34  ;;  %1103 = vmatpush.msra.mxu1 %v3217_v40 }
 0x10d   :  { %1063 = vmatpush.msra.mxu3 %v3212_v39  ;;  %1104 = vmatpush.msra.mxu1 %v3229_v41 }
 0x10f   :  { %1064 = vmatpush.msra.mxu3 %v3224_v35  ;;  %1105 = vmatpush.msra.mxu1 %v3241_v16 }
 0x110   :  { %v688_v42 = vpop.f32.mrf.mxu2  ;;  %v593_v36 = vpop.f32.mrf.mxu0 }
 0x111   :  { %v642_v57 = vpop.f32.mrf.mxu1  ;;  %v3243_v45 = vpop.f32.mrf.mxu3  ;;  %1065 = vmatpush.msra.mxu3 %v3236_v43  ;;  %1106 = vmatpush.msra.mxu1 %v3255_v47  ;;  %v640_v47 = vadd.f32 %v639_v28, %v590_v23  ;;  %v638_v23 = vadd.f32 %v3135_v13, %v3123_v8 }
 0x113   :  { %837 = vmatmul.bf16.gmra.mxu0 %v3021_v31  ;;  %1066 = vmatpush.msra.mxu3 %v3250_v46  ;;  %v3277_v31 = vld [vmem:[%s3855_s2 + $0x1b0] sm:$0xff]  ;;  %v689_v28 = vadd.f32 %v688_v42, %v640_v47 }
 0x114   :  { %886 = vmatmul.bf16.gmra.mxu1 %v3023_v33  ;;  %v635_v33 = vadd.f32 %v3093_v5, %v3091_v4  ;;  %v3308_v46 = vld [vmem:[%s3855_s2 + $0x190] sm:$0xff] }
 0x115   :  { %2142 = vmatmul.msk.bf16.gmra.mxu2 %vm524_vm0, %v2994_v19  ;;  %v3282_v19 = vld [vmem:[%s3855_s2 + $0x1b8] sm:$0xff]  ;;  %1067 = vmatpush.msra.mxu3 %v3265_v51 }
 0x116   :  { %1107 = vmatpush.msra.mxu1 %v3270_v52  ;;  %v684_v4 = vadd.f32 %v3119_v10, %v635_v33  ;;  %v633_v52 = vadd.f32 %v3080_v63, %v3078_v26  ;;  %v679_v10 = vadd.f32 %v3076_v11, %v630_v2  ;;  %v3323_v26 = vld [vmem:[%s3855_s2 + $0x380] sm:$0xff]  ;;  %v643_v33 = vadd.f32 %v642_v57, %v593_v36 }
 0x117   :  { %1068 = vmatpush.msra.mxu3 %v3277_v31  ;;  %1075 = vmatpush.msra.mxu0 %v3323_v26  ;;  %v687_v11 = vadd.f32 %v3179_v18, %v638_v23  ;;  %v726_v18 = vadd.f32 %v3051_v44, %v677_v60  ;;  %v3875_v23 = vmax.f32 %v3043_v53, %v3063_v22 }
 0x118   :  { %v691_v58 = vpop.f32.mrf.mxu2  ;;  %v595_v59 = vpop.f32.mrf.mxu0  ;;  %1108 = vmatpush.msra.mxu1 %v3282_v19  ;;  %v682_v63 = vadd.f32 %v3089_v50, %v633_v52  ;;  %v733_v2 = vadd.f32 %v3082_v3, %v684_v4  ;;  %v728_v42 = vadd.f32 %v3057_v62, %v679_v10  ;;  %v738_v3 = vadd.f32 %v3137_v14, %v689_v28  ;;  %v3386_v28 = vld [vmem:[%s3855_s2 + $0x360] sm:$0xff] }
 0x119   :  { %v644_v5 = vpop.f32.mrf.mxu1  ;;  %v754_v51 = vpop.f32.mrf.mxu3  ;;  %1069 = vmatpush.msra.mxu3 %v3291_v1  ;;  %v692_v50 = vadd.f32 %v691_v58, %v643_v33 }
 0x11a   :  { %1109 = vmatpush.msra.mxu1 %v3296_v37  ;;  %v645_v8 = vadd.f32 %v644_v5, %v595_v59  ;;  %v731_v48 = vadd.f32 %v3074_v25, %v682_v63 }
 0x11b   :  { %1070 = vmatpush.msra.mxu3 %v3308_v46  ;;  %v741_v62 = vadd.f32 %v3193_v29, %v692_v50 }
 0x11c   :  { %1110 = vmatpush.msra.mxu1 %v3313_v49 }
 0x11d   :  { %1153 = vmatpush.msrb.mxu3 %v3100_v7  ;;  %v951_v7 = vmax.f32 %v731_v48, %v733_v2  ;;  %v3879_v48 = vld [vmem:[#allocation7_spill] sm:$0xff] }
 0x11e   :  { %1193 = vmatpush.msrb.mxu1 %v3105_v54  ;;  %v736_v54 = vadd.f32 %v3095_v6, %v687_v11  ;;  %v3361_v6 = vld [vmem:[%s3855_s2 + $0x378] sm:$0xff] }
 0x11f   :  { %1154 = vmatpush.msrb.mxu3 %v3112_v27  ;;  %v949_v27 = vmax.f32 %v726_v18, %v728_v42  ;;  %1116 = vmatpush.msra.mxu2 %v3361_v6  ;;  %v3878_v42 = vld [vmem:[#allocation6_spill] sm:$0xff] }
 0x120   :  { %v693_v13 = vpop.f32.mrf.mxu2  ;;  %v803_v57 = vpop.f32.mrf.mxu0  ;;  %1194 = vmatpush.msrb.mxu1 %v3117_v55  ;;  %v953_v59 = vmax.f32 %v736_v54, %v738_v3  ;;  %v3367_v55 = vld [vmem:[%s3855_s2] sm:$0xff] }
 0x121   :  { %v694_v36 = vadd.f32 %v693_v13, %v645_v8  ;;  %v804_v47 = vadd.f32 %v803_v57, %v754_v51  ;;  %v852_v52 = vpop.f32.mrf.mxu1  ;;  %v756_v58 = vpop.f32.mrf.mxu3  ;;  %1155 = vmatpush.msrb.mxu3 %v3128_v9  ;;  %v3356_v51 = vld [vmem:[%s3855_s2 + $0x370] sm:$0xff]  ;;  %3874 = vst [vmem:[#allocation9_spill] sm:$0xff] %v3367_v55  ;;  %v961_v9 = vmax.f32 %v949_v27, %v951_v7  ;;  %v973_v4 = vperm.slane %v3367_v55, 0  ;;  %v3434_v7 = vld [vmem:[%s3855_s2 + $0x348] sm:$0xff] }
 0x122   :  { %1195 = vmatpush.msrb.mxu1 %v3133_v12  ;;  %1076 = vmatpush.msra.mxu0 %v3356_v51 }
 0x123   :  { %v743_v25 = vadd.f32 %v3243_v45, %v694_v36  ;;  %v853_v14 = vadd.f32 %v852_v52, %v804_v47  ;;  %1156 = vmatpush.msrb.mxu3 %v3144_v20  ;;  %v3880_v47 = vld [vmem:[#allocation8_spill] sm:$0xff] }
 0x124   :  { %1196 = vmatpush.msrb.mxu1 %v3149_v21  ;;  %1077 = vmatpush.msra.mxu0 %v3386_v28 }
 0x125   :  { %v955_v44 = vmax.f32 %v741_v62, %v743_v25  ;;  %1157 = vmatpush.msrb.mxu3 %v3159_v15 }
 0x126   :  { %1197 = vmatpush.msrb.mxu1 %v3164_v32  ;;  %v3391_v32 = vld [vmem:[%s3855_s2 + $0x368] sm:$0xff] }
 0x127   :  { %v963_v12 = vmax.f32 %v953_v59, %v955_v44  ;;  %1158 = vmatpush.msrb.mxu3 %v3172_v56  ;;  %1117 = vmatpush.msra.mxu2 %v3391_v32  ;;  %v3448_v44 = vld [vmem:[%s3855_s2 + $0x330] sm:$0xff] }
 0x128   :  { %v901_v29 = vpop.f32.mrf.mxu2  ;;  %v805_v5 = vpop.f32.mrf.mxu0  ;;  %1198 = vmatpush.msrb.mxu1 %v3177_v17 }
 0x129   :  { %v967_v45 = vmax.f32 %v961_v9, %v963_v12  ;;  %v3374_v20 = vadd.f32 %v901_v29, %v853_v14  ;;  %v806_v61 = vadd.f32 %v805_v5, %v756_v58  ;;  %v854_v10 = vpop.f32.mrf.mxu1  ;;  %v759_v63 = vpop.f32.mrf.mxu3  ;;  %1159 = vmatpush.msrb.mxu3 %v3186_v30  ;;  %v3429_v58 = vld [vmem:[%s3855_s2 + $0x340] sm:$0xff]  ;;  %v3465_v5 = vld [vmem:[%s3855_s2 + $0x328] sm:$0xff] }
 0x12a   :  { %1199 = vmatpush.msrb.mxu1 %v3191_v24 }
 0x12b   :  { %v969_v21 = vmax.f32 %v3875_v23, %v967_v45  ;;  %v855_v15 = vadd.f32 %v854_v10, %v806_v61  ;;  %1160 = vmatpush.msrb.mxu3 %v3200_v34 }
 0x12c   :  { %1200 = vmatpush.msrb.mxu1 %v3205_v38  ;;  %v3409_v38 = vld [vmem:[%s3855_s2 + $0x350] sm:$0xff] }
 0x12d   :  { %v975_v56 = vadd.f32 %v973_v4, %v969_v21  ;;  %1161 = vmatpush.msrb.mxu3 %v3212_v39  ;;  %v3414_v39 = vld [vmem:[%s3855_s2 + $0x358] sm:$0xff]  ;;  %1078 = vmatpush.msra.mxu0 %v3409_v38 }
 0x12e   :  { %1201 = vmatpush.msrb.mxu1 %v3217_v40  ;;  %1118 = vmatpush.msra.mxu2 %v3414_v39 }
 0x12f   :  { %v3397_v53 = vmax.f32 %v975_v56, 0.0  ;;  %1162 = vmatpush.msrb.mxu3 %v3224_v35  ;;  %v3877_v35 = vld [vmem:[#allocation5_spill] sm:$0xff]  ;;  %1079 = vmatpush.msra.mxu0 %v3429_v58 }
 0x130   :  { %v903_v22 = vpop.f32.mrf.mxu2  ;;  %v808_v33 = vpop.f32.mrf.mxu0  ;;  %1202 = vmatpush.msrb.mxu1 %v3229_v41  ;;  %1119 = vmatpush.msra.mxu2 %v3434_v7 }
 0x131   :  { %3876 = vst [vmem:[#allocation10_spill] sm:$0xff] %v3397_v53  ;;  %v1043_v17 = vrot.slane %v3397_v53, 4  ;;  %v904_v30 = vadd.f32 %v903_v22, %v855_v15  ;;  %v809_v60 = vadd.f32 %v808_v33, %v759_v63  ;;  %v857_v2 = vpop.f32.mrf.mxu1  ;;  %v761_v11 = vpop.f32.mrf.mxu3  ;;  %1163 = vmatpush.msrb.mxu3 %v3236_v43  ;;  %1080 = vmatpush.msra.mxu0 %v3448_v44 }
 0x132   :  { %1203 = vmatpush.msrb.mxu1 %v3241_v16 }
 0x133   :  { %v942_v24 = vmax.f32 %v3374_v20, %v904_v30  ;;  %v1044_v34 = vadd.f32 %v1043_v17, %v3397_v53  ;;  %v858_v50 = vadd.f32 %v857_v2, %v809_v60  ;;  %1164 = vmatpush.msrb.mxu3 %v3877_v35  ;;  %v3460_v20 = vld [vmem:[%s3855_s2 + $0x320] sm:$0xff]  ;;  %v3472_v17 = vld [vmem:[%s3855_s2 + $0x310] sm:$0xff]  ;;  %v3477_v30 = vld [vmem:[%s3855_s2 + $0x318] sm:$0xff] }
 0x134   :  { %1204 = vmatpush.msrb.mxu1 %v3878_v42  ;;  %1081 = vmatpush.msra.mxu0 %v3460_v20  ;;  %v3491_v35 = vld [vmem:[%s3855_s2 + $0x308] sm:$0xff] }
 0x135   :  { %v1045_v40 = vrot.slane %v1044_v34, 2  ;;  %1165 = vmatpush.msrb.mxu3 %v3879_v48 }
 0x136   :  { %1205 = vmatpush.msrb.mxu1 %v3880_v47  ;;  %1082 = vmatpush.msra.mxu0 %v3472_v17 }
 0x137   :  { %v1046_v8 = vadd.f32 %v1045_v40, %v1044_v34  ;;  %1166 = vmatpush.msrb.mxu3 %v3277_v31  ;;  %v3486_v40 = vld [vmem:[%s3855_s2 + $0x300] sm:$0xff] }
 0x138   :  { %v906_v13 = vpop.f32.mrf.mxu2  ;;  %v810_v36 = vpop.f32.mrf.mxu0  ;;  %1206 = vmatpush.msrb.mxu1 %v3282_v19  ;;  %1083 = vmatpush.msra.mxu0 %v3486_v40 }
 0x139   :  { %v907_v3 = vadd.f32 %v906_v13, %v858_v50  ;;  %v1047_v41 = vrot.slane %v1046_v8, 1  ;;  %v811_v57 = vadd.f32 %v810_v36, %v761_v11  ;;  %v859_v43 = vpop.f32.mrf.mxu1  ;;  %v764_v18 = vpop.f32.mrf.mxu3  ;;  %1167 = vmatpush.msrb.mxu3 %v3291_v1 }
 0x13a   :  { %1207 = vmatpush.msrb.mxu1 %v3296_v37 }
 0x13b   :  { %v1048_v52 = vadd.f32 %v1047_v41, %v1046_v8  ;;  %v860_v16 = vadd.f32 %v859_v43, %v811_v57  ;;  %1168 = vmatpush.msrb.mxu3 %v3308_v46  ;;  %v3453_v46 = vld [vmem:[%s3855_s2 + $0x338] sm:$0xff]  ;;  %v3502_v57 = vld [vmem:[%s3855_s2 + $0x2f0] sm:$0xff] }
 0x13c   :  { %1208 = vmatpush.msrb.mxu1 %v3313_v49  ;;  %1120 = vmatpush.msra.mxu2 %v3453_v46  ;;  %v3507_v43 = vld [vmem:[%s3855_s2 + $0x2f8] sm:$0xff] }
 0x13d   :  { %1071 = vmatmul.f32.vlgmr.msra.gmra.mxu3 %v1048_v52  ;;  %1111 = vmatmul.f32.vlgmr.msra.gmra.mxu1 %v1048_v52 }
 0x13e   :  { %1121 = vmatpush.msra.mxu2 %v3465_v5  ;;  %1084 = vmatpush.msra.mxu0 %v3502_v57 }
 0x140   :  { %v908_v31 = vpop.f32.mrf.mxu2  ;;  %v813_v62 = vpop.f32.mrf.mxu0  ;;  %1122 = vmatpush.msra.mxu2 %v3477_v30 }
 0x141   :  { %v909_v54 = vadd.f32 %v908_v31, %v860_v16  ;;  %v814_v25 = vadd.f32 %v813_v62, %v764_v18  ;;  %v862_v14 = vpop.f32.mrf.mxu1  ;;  %v766_v19 = vpop.f32.mrf.mxu3  ;;  %v3525_v62 = vld [vmem:[%s3855_s2 + $0x2e8] sm:$0xff] }
 0x142   :  { %1123 = vmatpush.msra.mxu2 %v3491_v35 }
 0x143   :  { %v944_v27 = vmax.f32 %v907_v3, %v909_v54  ;;  %v863_v1 = vadd.f32 %v862_v14, %v814_v25  ;;  %v3520_v54 = vld [vmem:[%s3855_s2 + $0x2e0] sm:$0xff] }
 0x144   :  { %1124 = vmatpush.msra.mxu2 %v3507_v43  ;;  %1085 = vmatpush.msra.mxu0 %v3520_v54 }
 0x145   :  { %v3443_v59 = vmax.f32 %v942_v24, %v944_v27 }
 0x146   :  { %1125 = vmatpush.msra.mxu2 %v3525_v62 }
 0x148   :  { %v911_v37 = vpop.f32.mrf.mxu2  ;;  %v815_v9 = vpop.f32.mrf.mxu0 }
 0x149   :  { %v912_v49 = vadd.f32 %v911_v37, %v863_v1  ;;  %v816_v12 = vadd.f32 %v815_v9, %v766_v19  ;;  %v864_v29 = vpop.f32.mrf.mxu1  ;;  %v769_v45 = vpop.f32.mrf.mxu3  ;;  %v3534_v1 = vld [vmem:[%s3855_s2 + $0x2d0] sm:$0xff]  ;;  %v3539_v37 = vld [vmem:[%s3855_s2 + $0x2d8] sm:$0xff] }
 0x14a   :  { %3881 = vst [vmem:[#allocation5_spill] sm:$0xff] %v3539_v37  ;;  %1086 = vmatpush.msra.mxu0 %v3534_v1  ;;  %1126 = vmatpush.msra.mxu2 %v3539_v37 }
 0x14b   :  { %v865_v4 = vadd.f32 %v864_v29, %v816_v12 }
 0x150   :  { %v913_v61 = vpop.f32.mrf.mxu2  ;;  %v818_v63 = vpop.f32.mrf.mxu0 }
 0x151   :  { %v914_v10 = vadd.f32 %v913_v61, %v865_v4  ;;  %v819_v23 = vadd.f32 %v818_v63, %v769_v45  ;;  %v867_v21 = vpop.f32.mrf.mxu1  ;;  %v771_v15 = vpop.f32.mrf.mxu3  ;;  %v3546_v45 = vld [vmem:[%s3855_s2 + $0x2c0] sm:$0xff]  ;;  %v3551_v4 = vld [vmem:[%s3855_s2 + $0x2c8] sm:$0xff] }
 0x152   :  { %3882 = vst [vmem:[#allocation6_spill] sm:$0xff] %v3546_v45  ;;  %1087 = vmatpush.msra.mxu0 %v3546_v45  ;;  %1127 = vmatpush.msra.mxu2 %v3551_v4 }
 0x153   :  { %v946_v56 = vmax.f32 %v912_v49, %v914_v10  ;;  %v868_v22 = vadd.f32 %v867_v21, %v819_v23  ;;  %3883 = vst [vmem:[#allocation7_spill] sm:$0xff] %v3551_v4 }
 0x158   :  { %v916_v33 = vpop.f32.mrf.mxu2  ;;  %v820_v2 = vpop.f32.mrf.mxu0 }
 0x159   :  { %v917_v60 = vadd.f32 %v916_v33, %v868_v22  ;;  %v821_v11 = vadd.f32 %v820_v2, %v771_v15  ;;  %v869_v24 = vpop.f32.mrf.mxu1  ;;  %v3481_v34 = vpop.f32.mrf.mxu3  ;;  %v3558_v2 = vld [vmem:[%s3855_s2 + $0x2b0] sm:$0xff] }
 0x15a   :  { %3884 = vst [vmem:[#allocation8_spill] sm:$0xff] %v3558_v2  ;;  %1088 = vmatpush.msra.mxu0 %v3558_v2 }
 0x15b   :  { %v870_v50 = vadd.f32 %v869_v24, %v821_v11  ;;  %v3563_v11 = vld [vmem:[%s3855_s2 + $0x2b8] sm:$0xff]  ;;  %v3568_v24 = vld [vmem:[%s3855_s2 + $0x2a0] sm:$0xff] }
 0x15c   :  { %3885 = vst [vmem:[#allocation11_spill] sm:$0xff] %v3563_v11  ;;  %1128 = vmatpush.msra.mxu2 %v3563_v11  ;;  %1089 = vmatpush.msra.mxu0 %v3568_v24 }
 0x15d   :  { %3886 = vst [vmem:[#allocation12_spill] sm:$0xff] %v3568_v24 }
 0x160   :  { %v918_v8 = vpop.f32.mrf.mxu2  ;;  %v823_v42 = vpop.f32.mrf.mxu0 }
 0x161   :  { %v919_v13 = vadd.f32 %v918_v8, %v870_v50  ;;  %v3495_v48 = vpop.f32.mrf.mxu1  ;;  %v776_v3 = vpop.f32.mrf.mxu3  ;;  %v3575_v50 = vld [vmem:[%s3855_s2 + $0x2a8] sm:$0xff]  ;;  %v3580_v8 = vld [vmem:[%s3855_s2 + $0x290] sm:$0xff]  ;;  %v824_v53 = vadd.f32 %v823_v42, %v3481_v34 }
 0x162   :  { %1129 = vmatpush.msra.mxu2 %v3575_v50  ;;  %1090 = vmatpush.msra.mxu0 %v3580_v8 }
 0x163   :  { %v948_v36 = vmax.f32 %v917_v60, %v919_v13  ;;  %v3585_v13 = vld [vmem:[%s3855_s2 + $0x298] sm:$0xff] }
 0x164   :  { %1130 = vmatpush.msra.mxu2 %v3585_v13  ;;  %1173 = vmatpush.msrb.mxu0 %v3323_v26  ;;  %v873_v26 = vadd.f32 %v3495_v48, %v824_v53 }
 0x165   :  { %v3497_v41 = vmax.f32 %v946_v56, %v948_v36 }
 0x166   :  { %1213 = vmatpush.msrb.mxu2 %v3332_v0  ;;  %1174 = vmatpush.msrb.mxu0 %v3356_v51 }
 0x168   :  { %v3513_v47 = vpop.f32.mrf.mxu2  ;;  %v825_v52 = vpop.f32.mrf.mxu0  ;;  %1214 = vmatpush.msrb.mxu2 %v3361_v6  ;;  %1175 = vmatpush.msrb.mxu0 %v3386_v28 }
 0x169   :  { %v3515_v16 = vpop.f32.mrf.mxu1  ;;  %v779_v31 = vpop.f32.mrf.mxu3  ;;  %v826_v11 = vadd.f32 %v825_v52, %v776_v3 }
 0x16a   :  { %1215 = vmatpush.msrb.mxu2 %v3391_v32  ;;  %1176 = vmatpush.msrb.mxu0 %v3409_v38  ;;  %v922_v32 = vadd.f32 %v3513_v47, %v873_v26 }
 0x16b   :  { %v875_v0 = vadd.f32 %v3515_v16, %v826_v11 }
 0x16c   :  { %1216 = vmatpush.msrb.mxu2 %v3414_v39  ;;  %1177 = vmatpush.msrb.mxu0 %v3429_v58  ;;  %v3613_v58 = vld [vmem:[%s3855_s2 + $0x8] sm:$0xff] }
 0x16e   :  { %1217 = vmatpush.msrb.mxu2 %v3434_v7  ;;  %1178 = vmatpush.msrb.mxu0 %v3448_v44 }
 0x170   :  { %v3529_v25 = vpop.f32.mrf.mxu2  ;;  %v828_v14 = vpop.f32.mrf.mxu0  ;;  %1218 = vmatpush.msrb.mxu2 %v3453_v46  ;;  %1179 = vmatpush.msrb.mxu0 %v3460_v20  ;;  %v974_v46 = vperm.slane %v3613_v58, 0  ;;  %v3887_v20 = vmax.f32 %v3443_v59, %v3497_v41  ;;  %v3891_v41 = vld [vmem:[#allocation8_spill] sm:$0xff] }
 0x171   :  { %v877_v19 = vpop.f32.mrf.mxu1  ;;  %v781_v27 = vpop.f32.mrf.mxu3  ;;  %v829_v18 = vadd.f32 %v828_v14, %v779_v31 }
 0x172   :  { %1219 = vmatpush.msrb.mxu2 %v3465_v5  ;;  %1180 = vmatpush.msrb.mxu0 %v3472_v17 }
 0x173   :  { %v878_v31 = vadd.f32 %v877_v19, %v829_v18 }
 0x174   :  { %1220 = vmatpush.msrb.mxu2 %v3477_v30  ;;  %1181 = vmatpush.msrb.mxu0 %v3486_v40  ;;  %v3888_v30 = vld [vmem:[#allocation5_spill] sm:$0xff] }
 0x176   :  { %1221 = vmatpush.msrb.mxu2 %v3491_v35  ;;  %1182 = vmatpush.msrb.mxu0 %v3502_v57  ;;  %v3889_v35 = vld [vmem:[#allocation6_spill] sm:$0xff]  ;;  %v3892_v57 = vld [vmem:[#allocation11_spill] sm:$0xff] }
 0x178   :  { %v926_v49 = vpop.f32.mrf.mxu2  ;;  %v830_v9 = vpop.f32.mrf.mxu0  ;;  %1222 = vmatpush.msrb.mxu2 %v3507_v43  ;;  %1183 = vmatpush.msrb.mxu0 %v3520_v54 }
 0x179   :  { %v879_v12 = vpop.f32.mrf.mxu1  ;;  %v784_v29 = vpop.f32.mrf.mxu3  ;;  %v831_v55 = vadd.f32 %v830_v9, %v781_v27  ;;  %v927_v51 = vadd.f32 %v926_v49, %v878_v31 }
 0x17a   :  { %1223 = vmatpush.msrb.mxu2 %v3525_v62  ;;  %1184 = vmatpush.msrb.mxu0 %v3534_v1 }
 0x17b   :  { %v880_v14 = vadd.f32 %v879_v12, %v831_v55  ;;  %v924_v55 = vadd.f32 %v3529_v25, %v875_v0  ;;  %v3890_v12 = vld [vmem:[#allocation7_spill] sm:$0xff] }
 0x17c   :  { %1224 = vmatpush.msrb.mxu2 %v3888_v30  ;;  %1185 = vmatpush.msrb.mxu0 %v3889_v35  ;;  %v2303_v35 = vld [vmem:[%s3854_s1 + $0x1d4] sm:$0xf0] }
 0x17d   :  { %v950_v38 = vmax.f32 %v922_v32, %v924_v55  ;;  %v2165_v32 = vld [vmem:[%s3854_s1 + $0x200] sm:$0xf] }
 0x17e   :  { %1225 = vmatpush.msrb.mxu2 %v3890_v12  ;;  %1186 = vmatpush.msrb.mxu0 %v3891_v41  ;;  %v2189_v12 = vld [vmem:[%s3854_s1 + $0x260] sm:$0xf]  ;;  %v2312_v41 = vld [vmem:[%s3854_s1 + $0x264] sm:$0xf0] }
 0x180   :  { %v928_v61 = vpop.f32.mrf.mxu2  ;;  %v833_v10 = vpop.f32.mrf.mxu0  ;;  %1226 = vmatpush.msrb.mxu2 %v3892_v57  ;;  %v2190_v57 = vor.u32 %v2312_v41, %v2189_v12 }
 0x181   :  { %v882_v63 = vpop.f32.mrf.mxu1  ;;  %v786_v23 = vpop.f32.mrf.mxu3  ;;  %v834_v4 = vadd.f32 %v833_v10, %v784_v29  ;;  %v929_v34 = vadd.f32 %v928_v61, %v880_v14  ;;  %v3893_v29 = vld [vmem:[#allocation12_spill] sm:$0xff] }
 0x182   :  { %1187 = vmatpush.msrb.mxu0 %v3893_v29  ;;  %1227 = vmatpush.msrb.mxu2 %v3575_v50  ;;  %v2302_v29 = vld [vmem:[%s3854_s1 + $0x1c4] sm:$0xf0] }
 0x183   :  { %v883_v42 = vadd.f32 %v882_v63, %v834_v4  ;;  %v952_v53 = vmax.f32 %v927_v51, %v929_v34  ;;  %v3894_v63 = vld [vmem:[#allocation10_spill] sm:$0xff]  ;;  %v2173_v34 = vld [vmem:[%s3854_s1 + $0x220] sm:$0xf]  ;;  %v2307_v51 = vld [vmem:[%s3854_s1 + $0x214] sm:$0xf0] }
 0x184   :  { %1188 = vmatpush.msrb.mxu0 %v3580_v8  ;;  %1228 = vmatpush.msrb.mxu2 %v3585_v13 }
 0x185   :  { %v962_v7 = vmax.f32 %v950_v38, %v952_v53  ;;  %v2306_v53 = vld [vmem:[%s3854_s1 + $0x204] sm:$0xf0]  ;;  %v2161_v38 = vld [vmem:[%s3854_s1 + $0x1f0] sm:$0xf] }
 0x188   :  { %v931_v21 = vpop.f32.mrf.mxu2  ;;  %v835_v15 = vpop.f32.mrf.mxu0 }
 0x189   :  { %v884_v56 = vpop.f32.mrf.mxu1  ;;  %v789_v22 = vpop.f32.mrf.mxu3  ;;  %v836_v45 = vadd.f32 %v835_v15, %v786_v23  ;;  %v932_v16 = vadd.f32 %v931_v21, %v883_v42  ;;  %v2308_v42 = vld [vmem:[%s3854_s1 + $0x224] sm:$0xf0] }
 0x18b   :  { %v885_v3 = vadd.f32 %v884_v56, %v836_v45 }
 0x190   :  { %v933_v33 = vpop.f32.mrf.mxu2  ;;  %v838_v60 = vpop.f32.mrf.mxu0 }
 0x191   :  { %v887_v36 = vpop.f32.mrf.mxu1  ;;  %v839_v37 = vadd.f32 %v838_v60, %v789_v22  ;;  %v791_v27 = vpop.f32.mrf.mxu3  ;;  %v934_v18 = vadd.f32 %v933_v33, %v885_v3  ;;  %v2174_v3 = vor.u32 %v2308_v42, %v2173_v34  ;;  %v2384_v34 = vmov 0.0  }
 0x193   :  { %v888_v52 = vadd.f32 %v887_v36, %v839_v37  ;;  %v954_v39 = vmax.f32 %v932_v16, %v934_v18  ;;  %1396 = vmatpush.bf16.msra.mxu3 %v2174_v3  ;;  %v2316_v18 = vld [vmem:[%s3854_s1 + $0x2a4] sm:$0xf0]  ;;  %v2166_v16 = vor.u32 %v2306_v53, %v2165_v32 }
 0x198   :  { %v936_v2 = vpop.f32.mrf.mxu2  ;;  %v840_v24 = vpop.f32.mrf.mxu0 }
 0x199   :  { %v841_v9 = vadd.f32 %v840_v24, %v791_v27  ;;  %v889_v6 = vpop.f32.mrf.mxu1  ;;  %v937_v19 = vadd.f32 %v936_v2, %v888_v52  ;;  %v2169_v52 = vld [vmem:[%s3854_s1 + $0x210] sm:$0xf] }
 0x19a   :  { %v2170_v55 = vor.u32 %v2307_v51, %v2169_v52 }
 0x19b   :  { %v890_v28 = vadd.f32 %v889_v6, %v841_v9  ;;  %v2205_v6 = vld [vmem:[%s3854_s1 + $0x2a0] sm:$0xf] }
 0x19c   :  { %1397 = vmatpush.bf16.msra.mxu3 %v2170_v55 }
 0x1a0   :  { %v938_v48 = vpop.f32.mrf.mxu2  ;;  %1398 = vmatpush.bf16.msra.mxu3 %v2166_v16 }
 0x1a1   :  { %v939_v37 = vadd.f32 %v938_v48, %v890_v28  ;;  %v2206_v28 = vor.u32 %v2316_v18, %v2205_v6  ;;  %v2201_v48 = vld [vmem:[%s3854_s1 + $0x290] sm:$0xf] }
 0x1a3   :  { %v956_v25 = vmax.f32 %v937_v19, %v939_v37  ;;  %v2315_v19 = vld [vmem:[%s3854_s1 + $0x294] sm:$0xf0] }
 0x1a4   :  { %v2202_v37 = vor.u32 %v2315_v19, %v2201_v48  ;;  %v3895_v19 = vld [vmem:[#allocation9_spill] sm:$0xff] }
 0x1a5   :  { %v964_v47 = vmax.f32 %v954_v39, %v956_v25  ;;  %v2305_v39 = vld [vmem:[%s3854_s1 + $0x1f4] sm:$0xf0]  ;;  %v2197_v25 = vld [vmem:[%s3854_s1 + $0x280] sm:$0xf] }
 0x1a7   :  { %v968_v44 = vmax.f32 %v962_v7, %v964_v47  ;;  %v2162_v7 = vor.u32 %v2305_v39, %v2161_v38  ;;  %v2314_v47 = vld [vmem:[%s3854_s1 + $0x284] sm:$0xf0] }
 0x1a9   :  { %v970_v5 = vmax.f32 %v3887_v20, %v968_v44  ;;  %v2198_v44 = vor.u32 %v2314_v47, %v2197_v25  ;;  %1399 = vmatpush.bf16.msra.mxu3 %v2162_v7  ;;  %v2304_v20 = vld [vmem:[%s3854_s1 + $0x1e4] sm:$0xf0]  ;;  %v1261_v25 = vperm.slane %v3895_v19, 2 }
 0x1ab   :  { %v976_v49 = vadd.f32 %v974_v46, %v970_v5  ;;  %v2157_v46 = vld [vmem:[%s3854_s1 + $0x1e0] sm:$0xf]  ;;  %v2193_v5 = vld [vmem:[%s3854_s1 + $0x270] sm:$0xf] }
 0x1ad   :  { %v978_v17 = vmax.f32 %v976_v49, 0.0  ;;  %v2158_v49 = vor.u32 %v2304_v20, %v2157_v46  ;;  %v1258_v46 = vperm.slane %v3613_v58, 1 }
 0x1af   :  { %v1049_v40 = vrot.slane %v978_v17, 4  ;;  %1400 = vmatpush.bf16.msra.mxu3 %v2158_v49  ;;  %v1262_v49 = vperm.slane %v3613_v58, 2 }
 0x1b1   :  { %v1050_v59 = vadd.f32 %v1049_v40, %v978_v17  ;;  %v2153_v40 = vld [vmem:[%s3854_s1 + $0x1d0] sm:$0xf] }
 0x1b3   :  { %v1051_v43 = vrot.slane %v1050_v59, 2 }
 0x1b5   :  { %v1052_v54 = vadd.f32 %v1051_v43, %v1050_v59  ;;  %v2154_v59 = vor.u32 %v2303_v35, %v2153_v40  ;;  %v2149_v43 = vld [vmem:[%s3854_s1 + $0x1c0] sm:$0xf] }
 0x1b7   :  { %v1053_v62 = vrot.slane %v1052_v54, 1  ;;  %1401 = vmatpush.bf16.msra.mxu3 %v2154_v59 }
 0x1b9   :  { %v1054_v1 = vadd.f32 %v1053_v62, %v1052_v54  ;;  %v2185_v54 = vld [vmem:[%s3854_s1 + $0x250] sm:$0xf]  ;;  %v2150_v62 = vor.u32 %v2302_v29, %v2149_v43 }
 0x1ba   :  { %v1112_v21 = vpop.f32.mrf.mxu1 }
 0x1bb   :  { %1091 = vmatmul.f32.vlgmr.msra.gmra.mxu0 %v1054_v1  ;;  %1131 = vmatmul.f32.vlgmr.msra.gmra.mxu2 %v1054_v1  ;;  %v2311_v1 = vld [vmem:[%s3854_s1 + $0x254] sm:$0xf0] }
 0x1bc   :  { %1409 = vmatpush.bf16.msra.mxu0 %v2206_v28  ;;  %1402 = vmatpush.bf16.msra.mxu3 %v2150_v62 }
 0x1c0   :  { %v1072_v45 = vpop.f32.mrf.mxu3  ;;  %1410 = vmatpush.bf16.msra.mxu0 %v2202_v37  ;;  %v1257_v37 = vperm.slane %v3895_v19, 1 }
 0x1c4   :  { %1411 = vmatpush.bf16.msra.mxu0 %v2198_v44 }
 0x238   :  { %v1092_v4 = vpop.f32.mrf.mxu0 }
 0x239   :  { %v1093_v61 = vadd.f32 %v1092_v4, %v1072_v45  ;;  %v2186_v45 = vor.u32 %v2311_v1, %v2185_v54  ;;  %v2145_v4 = vld [vmem:[%s3854_s1 + $0x1b0] sm:$0xf] }
 0x23b   :  { %v1135_v10 = vperm.slane %v1093_v61, 0  ;;  %v2301_v61 = vld [vmem:[%s3854_s1 + $0x1b4] sm:$0xf0] }
 0x23d   :  { %v3638_v23 = vsub.f32 %v3894_v63, %v1135_v10  ;;  %v2146_v10 = vor.u32 %v2301_v61, %v2145_v4  ;;  %v2181_v63 = vld [vmem:[%s3854_s1 + $0x240] sm:$0xf] }
 0x23e   :  { %v1132_v15 = vpop.f32.mrf.mxu2 }
 0x23f   :  { %v1139_v56 = vmul.f32 %v3638_v23, %v3638_v23  ;;  %v1133_v22 = vadd.f32 %v1132_v15, %v1112_v21  ;;  %v2310_v21 = vld [vmem:[%s3854_s1 + $0x244] sm:$0xf0]  ;;  %1403 = vmatpush.bf16.msra.mxu3 %v2146_v10 }
 0x240   :  { %v2182_v15 = vor.u32 %v2310_v21, %v2181_v63 }
 0x241   :  { %v1141_v33 = vrot.slane %v1139_v56, 4  ;;  %v1136_v60 = vperm.slane %v1133_v22, 0  ;;  %v2309_v22 = vld [vmem:[%s3854_s1 + $0x234] sm:$0xf0] }
 0x243   :  { %v1142_v2 = vadd.f32 %v1141_v33, %v1139_v56  ;;  %v3642_v11 = vsub.f32 %v978_v17, %v1136_v60  ;;  %v2313_v17 = vld [vmem:[%s3854_s1 + $0x274] sm:$0xf0]  ;;  %v2177_v56 = vld [vmem:[%s3854_s1 + $0x230] sm:$0xf] }
 0x244   :  { %v2194_v30 = vor.u32 %v2313_v17, %v2193_v5  ;;  %v2178_v60 = vor.u32 %v2309_v22, %v2177_v56 }
 0x245   :  { %v1143_v24 = vrot.slane %v1142_v2, 2  ;;  %v1140_v50 = vmul.f32 %v3642_v11, %v3642_v11 }
 0x246   :  { %1412 = vmatpush.bf16.msra.mxu0 %v2194_v30 }
 0x247   :  { %v1144_v8 = vadd.f32 %v1143_v24, %v1142_v2  ;;  %v1147_v13 = vrot.slane %v1140_v50, 4  ;;  %v1425_v24 = vld [vmem:[%s3855_s2 + $0x40] sm:$0xff] }
 0x248   :  { %1442 = vmatpush.msra.mxu1 %v1425_v24  ;;  %1505 = vmatpush.msra.mxu2 %v1425_v24 }
 0x249   :  { %v1145_v36 = vrot.slane %v1144_v8, 1  ;;  %v1148_v31 = vadd.f32 %v1147_v13, %v1140_v50 }
 0x24a   :  { %1413 = vmatpush.bf16.msra.mxu0 %v2190_v57 }
 0x24b   :  { %v1146_v14 = vadd.f32 %v1145_v36, %v1144_v8  ;;  %v1149_v27 = vrot.slane %v1148_v31, 2 }
 0x24d   :  { %v1150_v9 = vadd.f32 %v1149_v27, %v1148_v31  ;;  %1169 = vmatmul.f32.vlgmr.msrb.gmra.mxu3 %v1146_v14  ;;  %1209 = vmatmul.f32.vlgmr.msrb.gmra.mxu1 %v1146_v14  ;;  %v1424_v31 = vld [vmem:[%s3855_s2 + $0x30] sm:$0xff]  ;;  %v1423_v14 = vld [vmem:[%s3855_s2 + $0x20] sm:$0xff] }
 0x24e   :  { %1414 = vmatpush.bf16.msra.mxu0 %v2186_v45  ;;  %1443 = vmatpush.msra.mxu1 %v1424_v31 }
 0x24f   :  { %v1151_v26 = vrot.slane %v1150_v9, 1  ;;  %1506 = vmatpush.msra.mxu2 %v1424_v31 }
 0x250   :  { %1444 = vmatpush.msra.mxu1 %v1423_v14 }
 0x251   :  { %v1152_v0 = vadd.f32 %v1151_v26, %v1150_v9  ;;  %v1422_v26 = vld [vmem:[%s3855_s2 + $0x10] sm:$0xff]  ;;  %1507 = vmatpush.msra.mxu2 %v1423_v14 }
 0x252   :  { %1415 = vmatpush.bf16.msra.mxu0 %v2182_v15  ;;  %1445 = vmatpush.msra.mxu1 %v1422_v26 }
 0x253   :  { %1189 = vmatmul.f32.vlgmr.msrb.gmra.mxu0 %v1152_v0  ;;  %1229 = vmatmul.f32.vlgmr.msrb.gmra.mxu2 %v1152_v0 }
 0x254   :  { %1508 = vmatpush.msra.mxu2 %v1422_v26  ;;  %1575 = vmatpush.msrb.mxu1 %v1425_v24 }
 0x255   :  { %1446 = vmatmul.f32.vlgmr.msra.gmra.mxu1 %v2384_v34 }
 0x256   :  { %1416 = vmatpush.bf16.msra.mxu0 %v2178_v60  ;;  %1645 = vmatpush.msrb.mxu2 %v1425_v24 }
 0x257   :  { %1576 = vmatpush.msrb.mxu1 %v1424_v31 }
 0x258   :  { %1646 = vmatpush.msrb.mxu2 %v1424_v31 }
 0x259   :  { %1577 = vmatpush.msrb.mxu1 %v1423_v14 }
 0x25a   :  { %1647 = vmatpush.msrb.mxu2 %v1423_v14 }
 0x25b   :  { %1578 = vmatpush.msrb.mxu1 %v1422_v26 }
 0x25c   :  { %1648 = vmatpush.msrb.mxu2 %v1422_v26 }
 0x2ca   :  { %v1210_v50 = vpop.f32.mrf.mxu1 }
 0x2cb   :  { %v1211_v36 = vadd.f32 1e-05, %v1210_v50 }
 0x2d0   :  { %v1170_v33 = vpop.f32.mrf.mxu3  ;;  %v1190_v8 = vpop.f32.mrf.mxu0 }
 0x2d1   :  { %v1171_v2 = vadd.f32 1e-05, %v1170_v33 }
 0x2d2   :  { %v1447_v57 = vpop.f32.mrf.mxu1 }
 0x2d3   :  { %v1191_v13 = vadd.f32 %v1190_v8, %v1171_v2 }
 0x2d5   :  { %2321 = vrsqrt.f32 %v1191_v13  ;;  %vm1239_vm2 = vweird.f32 %v1191_v13 }
 0x2d6   :  { %v1230_v27 = vpop.f32.mrf.mxu2 }
 0x2d7   :  { %v1231_v9 = vadd.f32 %v1230_v27, %v1211_v36 }
 0x2d9   :  { %2323 = vrsqrt.f32 %v1231_v9  ;;  %vm1249_vm5 = vweird.f32 %v1231_v9 }
 0x2db   :  { %v2322_v0 = vpop.eup %2321 }
 0x2dc   :  { %v1234_v42 = vmul.f32 %v2322_v0, %v1191_v13  ;;  %vm1240_vm1 = vweird.f32 %v2322_v0 }
 0x2dd   :  { %vm1241_vm3 = vmor %vm1239_vm2, %vm1240_vm1 }
 0x2de   :  { %v1235_v3 = vmul.f32 %v2322_v0, %v1234_v42 }
 0x2df   :  { %v2324_v52 = vpop.eup %2323 }
 0x2e0   :  { %v1236_v51 = vmul.f32 0.5, %v1235_v3  ;;  %v1244_v6 = vmul.f32 %v2324_v52, %v1231_v9  ;;  %vm1250_vm4 = vweird.f32 %v2324_v52 }
 0x2e1   :  { %vm1251_vm6 = vmor %vm1249_vm5, %vm1250_vm4 }
 0x2e2   :  { %v1237_v55 = vsub.f32 1.5, %v1236_v51  ;;  %v1245_v18 = vmul.f32 %v2324_v52, %v1244_v6 }
 0x2e4   :  { %v1238_v28 = vmul.f32 %v2322_v0, %v1237_v55  ;;  %v1246_v32 = vmul.f32 0.5, %v1245_v18 }
 0x2e6   :  { %v1242_v53 = vsel %vm1241_vm3, %v2322_v0, %v1238_v28  ;;  %v1247_v48 = vsub.f32 1.5, %v1246_v32 }
 0x2e7   :  { %v1253_v16 = vperm.slane %v1242_v53, 0 }
 0x2e8   :  { %v1248_v38 = vmul.f32 %v2324_v52, %v1247_v48 }
 0x2e9   :  { %v1255_v39 = vmul.f32 %v1253_v16, %v3638_v23  ;;  %v1299_v23 = vperm.slane %v3895_v19, 3 }
 0x2ea   :  { %v1252_v7 = vsel %vm1251_vm6, %v2324_v52, %v1248_v38 }
 0x2eb   :  { %v1259_v47 = vmul.f32 %v1257_v37, %v1255_v39  ;;  %v1254_v44 = vperm.slane %v1252_v7, 0 }
 0x2ed   :  { %v1256_v20 = vmul.f32 %v1254_v44, %v3642_v11  ;;  %v1263_v5 = vadd.f32 %v1261_v25, %v1259_v47 }
 0x2ef   :  { %v1260_v17 = vmul.f32 %v1258_v46, %v1256_v20  ;;  %v1265_v30 = vpack.c.bf16 %v1263_v5, %v1263_v5 }
 0x2f1   :  { %1404 = vmatmul.bf16.vlgmr.msra.gmra.mxu3 %v1265_v30  ;;  %v1264_v40 = vadd.f32 %v1262_v49, %v1260_v17 }
 0x2f3   :  { %v1266_v35 = vpack.c.bf16 %v1264_v40, %v1264_v40 }
 0x2f5   :  { %1417 = vmatmul.bf16.vlgmr.msra.gmra.mxu0 %v1266_v35 }
 0x372   :  { %v1418_v12 = vpop.f32.mrf.mxu0 }
 0x374   :  { %v1405_v59 = vpop.f32.mrf.mxu3 }
 0x375   :  { %v1406_v41 = vadd.f32 %v1405_v59, %v1299_v23 }
 0x377   :  { %v3761_v43 = vadd.f32 %v1418_v12, %v1406_v41 }
 0x379   :  { %v1450_v29 = vadd.f32 %v1447_v57, %v3761_v43 }
 0x37a   :  { %v1420_v11 = vpop.f32.mrf.mxu0 }
 0x37b   :  { %2325 = vtanh.f32 %v1450_v29  ;;  %v2207_v62 = vmul.f32 -1.442695, %v1450_v29 }
 0x37c   :  { %v1407_v54 = vpop.f32.mrf.mxu3 }
 0x37d   :  { %2327 = vpow2.f32 %v2207_v62 }
 0x381   :  { %v2326_v58 = vpop.eup %2325 }
 0x382   :  { %1473 = vrot.lane.b32.xlu0 %v2326_v58, %s2385_s11 }
 0x383   :  { %v2328_v1 = vpop.eup %2327 }
 0x384   :  { %v1454_v45 = vadd.f32 1.0, %v2328_v1 }
 0x386   :  { %2329 = vrcp.f32 %v1454_v45  ;;  %v1466_v15 = vand.u32 2147483648, %v1454_v45  ;;  %vm1460_vm8 = vweird.f32 %v1454_v45  ;;  %v1464_v56 = vand.u32 2147483647, %v1454_v45 }
 0x388   :  { %v1467_v33 = vor.u32 1.1754944e-38, %v1466_v15  ;;  %vm1465_vm10 = vcmp.eq.f32.partialorder %v1464_v56, 8.507059e+37 }
 0x38c   :  { %v2330_v4 = vpop.eup %2329 }
 0x38d   :  { %v1456_v61 = vmul.f32 %v2330_v4, %v1454_v45  ;;  %vm1461_vm7 = vweird.f32 %v2330_v4 }
 0x38e   :  { %vm1462_vm9 = vmor %vm1460_vm8, %vm1461_vm7 }
 0x38f   :  { %v1457_v10 = vsub.f32 1.0, %v1456_v61 }
 0x391   :  { %v1458_v63 = vmul.f32 %v2330_v4, %v1457_v10 }
 0x393   :  { %v1459_v21 = vadd.f32 %v2330_v4, %v1458_v63 }
 0x395   :  { %v1463_v22 = vsel %vm1462_vm9, %v2330_v4, %v1459_v21 }
 0x396   :  { %v1468_v2 = vsel %vm1465_vm10, %v1467_v33, %v1463_v22 }
 0x397   :  { %v1471_v50 = vmul.f32 0.0, %v1468_v2 }
 0x3f4   :  { %v1474_v60 = vpop.permute.xlu0 %1473 }
 0x3f5   :  { %v1476_v24 = vmul.f32 %v1474_v60, %v1468_v2 }
 0x3f7   :  { %1478 = vrot.lane.b32.xlu0 %v1476_v24, %s2386_s12 }
 0x469   :  { %v1479_v8 = vpop.permute.xlu0 %1478 }
 0x46a   :  { %v1481_v13 = vadd.f32 %v1479_v8, %v1471_v50 }
 0x46c   :  { %2331 = vtanh.f32 %v1481_v13  ;;  %v1538_v39 = vrot.slane %v1481_v13, 6 }
 0x472   :  { %v2332_v36 = vpop.eup %2331 }
 0x473   :  { %1484 = vrot.lane.b32.xlu1 %v2332_v36, %s2385_s11 }
 0x4e5   :  { %v1485_v31 = vpop.permute.xlu1 %1484 }
 0x4e6   :  { %v1487_v14 = vmul.f32 %v1485_v31, %v1468_v2 }
 0x4e8   :  { %1489 = vrot.lane.b32.xlu1 %v1487_v14, %s2386_s12 }
 0x55a   :  { %v1490_v27 = vpop.permute.xlu1 %1489 }
 0x55b   :  { %2208 = vmatmul.msk.f32.vlgmr.msra.gmra.mxu2 %vm1426_vm11, %v1490_v27 }
 0x5de   :  { %v1510_v9 = vpop.f32.mrf.mxu2 }
 0x5df   :  { %v1514_v26 = vrot.slane %v1510_v9, 6 }
 0x5e1   :  { %v1516_v0 = vadd.f32 %v1514_v26, %v3761_v43 }
 0x5e3   :  { %2333 = vtanh.f32 %v1516_v0  ;;  %v2209_v42 = vmul.f32 -1.442695, %v1516_v0 }
 0x5e5   :  { %2335 = vpow2.f32 %v2209_v42 }
 0x5e9   :  { %v2334_v34 = vpop.eup %2333 }
 0x5ea   :  { %1542 = vrot.lane.b32.xlu2 %v2334_v34, %s2385_s11 }
 0x5eb   :  { %v2336_v3 = vpop.eup %2335 }
 0x5ec   :  { %v1520_v52 = vadd.f32 1.0, %v2336_v3 }
 0x5ee   :  { %2337 = vrcp.f32 %v1520_v52  ;;  %v1532_v32 = vand.u32 2147483648, %v1520_v52  ;;  %vm1526_vm13 = vweird.f32 %v1520_v52  ;;  %v1530_v53 = vand.u32 2147483647, %v1520_v52 }
 0x5f0   :  { %v1533_v16 = vor.u32 1.1754944e-38, %v1532_v32  ;;  %vm1531_vm15 = vcmp.eq.f32.partialorder %v1530_v53, 8.507059e+37 }
 0x5f4   :  { %v2338_v51 = vpop.eup %2337 }
 0x5f5   :  { %v1522_v6 = vmul.f32 %v2338_v51, %v1520_v52  ;;  %vm1527_vm12 = vweird.f32 %v2338_v51 }
 0x5f6   :  { %vm1528_vm14 = vmor %vm1526_vm13, %vm1527_vm12 }
 0x5f7   :  { %v1523_v55 = vsub.f32 1.0, %v1522_v6 }
 0x5f9   :  { %v1524_v18 = vmul.f32 %v2338_v51, %v1523_v55 }
 0x5fb   :  { %v1525_v28 = vadd.f32 %v2338_v51, %v1524_v18 }
 0x5fd   :  { %v1529_v48 = vsel %vm1528_vm14, %v2338_v51, %v1525_v28 }
 0x5fe   :  { %v1534_v37 = vsel %vm1531_vm15, %v1533_v16, %v1529_v48 }
 0x5ff   :  { %v1540_v25 = vmul.f32 %v1538_v39, %v1534_v37  ;;  %v1697_v39 = vld [vmem:[%s3855_s2 + $0x50] sm:$0xff] }
 0x644   :  { %v1543_v19 = vpop.permute.xlu2 %1542 }
 0x645   :  { %v1545_v38 = vmul.f32 %v1543_v19, %v1534_v37  ;;  %v1700_v19 = vld [vmem:[%s3855_s2 + $0x80] sm:$0xff] }
 0x646   :  { %1720 = vmatpush.msra.mxu1 %v1700_v19 }
 0x647   :  { %1547 = vrot.lane.b32.xlu2 %v1545_v38, %s2386_s12  ;;  %v1698_v38 = vld [vmem:[%s3855_s2 + $0x60] sm:$0xff] }
 0x6a1   :  { %v1548_v7 = vpop.permute.xlu2 %1547 }
 0x6a2   :  { %v1550_v47 = vadd.f32 %v1548_v7, %v1540_v25 }
 0x6a4   :  { %2339 = vtanh.f32 %v1550_v47  ;;  %v1608_v63 = vrot.slane %v1550_v47, 6 }
 0x6aa   :  { %v2340_v44 = vpop.eup %2339 }
 0x6ab   :  { %1553 = vrot.lane.b32.xlu0 %v2340_v44, %s2385_s11  ;;  %v1744_v44 = vld [vmem:[%s3855_s2 + $0x180] sm:$0xff] }
 0x6ac   :  { %1746 = vmatpush.msrb.mxu3 %v1744_v44 }
 0x71d   :  { %v1554_v46 = vpop.permute.xlu0 %1553 }
 0x71e   :  { %v1556_v20 = vmul.f32 %v1554_v46, %v1534_v37  ;;  %v1699_v37 = vld [vmem:[%s3855_s2 + $0x70] sm:$0xff] }
 0x71f   :  { %1721 = vmatpush.msra.mxu1 %v1699_v37  ;;  %v1743_v46 = vld [vmem:[%s3855_s2 + $0x170] sm:$0xff] }
 0x720   :  { %v1558_v5 = vrot.slane %v1556_v20, 2  ;;  %v1742_v20 = vld [vmem:[%s3855_s2 + $0x160] sm:$0xff]  ;;  %1747 = vmatpush.msrb.mxu3 %v1743_v46 }
 0x721   :  { %1722 = vmatpush.msra.mxu1 %v1698_v38 }
 0x722   :  { %1559 = vrot.lane.b32.xlu1 %v1558_v5, %s2386_s12  ;;  %v1741_v5 = vld [vmem:[%s3855_s2 + $0x150] sm:$0xff]  ;;  %1748 = vmatpush.msrb.mxu3 %v1742_v20 }
 0x723   :  { %1723 = vmatpush.msra.mxu1 %v1697_v39 }
 0x724   :  { %1749 = vmatpush.msrb.mxu3 %v1741_v5 }
 0x794   :  { %v1560_v49 = vpop.permute.xlu1 %1559 }
 0x795   :  { %2210 = vmatmul.msk.f32.vlgmr.msrb.gmra.mxu1 %vm1426_vm11, %v1560_v49  ;;  %v1740_v49 = vld [vmem:[%s3855_s2 + $0x140] sm:$0xff] }
 0x796   :  { %1750 = vmatpush.msrb.mxu3 %v1740_v49 }
 0x812   :  { %v1580_v17 = vpop.f32.mrf.mxu1 }
 0x813   :  { %v1584_v30 = vrot.slane %v1580_v17, 4  ;;  %v1739_v17 = vld [vmem:[%s3855_s2 + $0x130] sm:$0xff] }
 0x814   :  { %1751 = vmatpush.msrb.mxu3 %v1739_v17 }
 0x815   :  { %v1586_v40 = vadd.f32 %v1584_v30, %v3761_v43  ;;  %v1738_v30 = vld [vmem:[%s3855_s2 + $0x120] sm:$0xff] }
 0x816   :  { %1752 = vmatpush.msrb.mxu3 %v1738_v30 }
 0x817   :  { %2341 = vtanh.f32 %v1586_v40  ;;  %v2211_v23 = vmul.f32 -1.442695, %v1586_v40  ;;  %v1737_v40 = vld [vmem:[%s3855_s2 + $0x110] sm:$0xff] }
 0x818   :  { %1753 = vmatpush.msrb.mxu3 %v1737_v40 }
 0x819   :  { %2343 = vpow2.f32 %v2211_v23  ;;  %v1735_v23 = vld [vmem:[%s3855_s2 + $0xf0] sm:$0xff] }
 0x81d   :  { %v2342_v35 = vpop.eup %2341 }
 0x81e   :  { %1612 = vrot.lane.b32.xlu2 %v2342_v35, %s2385_s11  ;;  %v1736_v35 = vld [vmem:[%s3855_s2 + $0x100] sm:$0xff] }
 0x81f   :  { %v2344_v12 = vpop.eup %2343  ;;  %1754 = vmatpush.msrb.mxu3 %v1736_v35 }
 0x820   :  { %v1590_v59 = vadd.f32 1.0, %v2344_v12  ;;  %v1734_v12 = vld [vmem:[%s3855_s2 + $0xe0] sm:$0xff] }
 0x821   :  { %1755 = vmatpush.msrb.mxu3 %v1735_v23 }
 0x822   :  { %2345 = vrcp.f32 %v1590_v59  ;;  %v1602_v58 = vand.u32 2147483648, %v1590_v59  ;;  %vm1596_vm1 = vweird.f32 %v1590_v59  ;;  %v1600_v62 = vand.u32 2147483647, %v1590_v59 }
 0x823   :  { %1756 = vmatpush.msrb.mxu3 %v1734_v12 }
 0x824   :  { %v1603_v45 = vor.u32 1.1754944e-38, %v1602_v58  ;;  %vm1601_vm3 = vcmp.eq.f32.partialorder %v1600_v62, 8.507059e+37  ;;  %v2357_v58 = vld [vmem:[%s3855_s2] sm:$0xff] }
 0x825   :  { %v1701_v62 = vperm.slane %v2357_v58, 4 }
 0x828   :  { %v2346_v41 = vpop.eup %2345 }
 0x829   :  { %v1592_v57 = vmul.f32 %v2346_v41, %v1590_v59  ;;  %vm1597_vm0 = vweird.f32 %v2346_v41  ;;  %v1733_v59 = vld [vmem:[%s3855_s2 + $0xd0] sm:$0xff] }
 0x82a   :  { %vm1598_vm2 = vmor %vm1596_vm1, %vm1597_vm0  ;;  %1757 = vmatpush.msrb.mxu3 %v1733_v59 }
 0x82b   :  { %v1593_v29 = vsub.f32 1.0, %v1592_v57 }
 0x82d   :  { %v1594_v11 = vmul.f32 %v2346_v41, %v1593_v29  ;;  %v1731_v29 = vld [vmem:[%s3855_s2 + $0xb0] sm:$0xff] }
 0x82f   :  { %v1595_v54 = vadd.f32 %v2346_v41, %v1594_v11  ;;  %v1730_v11 = vld [vmem:[%s3855_s2 + $0xa0] sm:$0xff] }
 0x831   :  { %v1599_v1 = vsel %vm1598_vm2, %v2346_v41, %v1595_v54  ;;  %v1732_v41 = vld [vmem:[%s3855_s2 + $0xc0] sm:$0xff]  ;;  %v1729_v54 = vld [vmem:[%s3855_s2 + $0x90] sm:$0xff] }
 0x832   :  { %v1604_v61 = vsel %vm1601_vm3, %v1603_v45, %v1599_v1  ;;  %1758 = vmatpush.msrb.mxu3 %v1732_v41 }
 0x833   :  { %v1610_v21 = vmul.f32 %v1608_v63, %v1604_v61 }
 0x834   :  { %1759 = vmatpush.msrb.mxu3 %v1731_v29 }
 0x836   :  { %1760 = vmatpush.msrb.mxu3 %v1730_v11 }
 0x838   :  { %1761 = vmatpush.msrb.mxu3 %v1729_v54 }
 0x878   :  { %v1613_v4 = vpop.permute.xlu2 %1612 }
 0x879   :  { %v1615_v10 = vmul.f32 %v1613_v4, %v1604_v61 }
 0x87b   :  { %1617 = vrot.lane.b32.xlu0 %v1615_v10, %s2386_s12 }
 0x8ed   :  { %v1618_v15 = vpop.permute.xlu0 %1617 }
 0x8ee   :  { %v1620_v56 = vadd.f32 %v1618_v15, %v1610_v21 }
 0x8f0   :  { %2347 = vtanh.f32 %v1620_v56  ;;  %v1678_v28 = vrot.slane %v1620_v56, 6 }
 0x8f6   :  { %v2348_v22 = vpop.eup %2347 }
 0x8f7   :  { %1623 = vrot.lane.b32.xlu1 %v2348_v22, %s2385_s11 }
 0x969   :  { %v1624_v33 = vpop.permute.xlu1 %1623 }
 0x96a   :  { %v1626_v60 = vmul.f32 %v1624_v33, %v1604_v61  ;;  %v1745_v61 = vperm.slane %v2357_v58, 5 }
 0x96c   :  { %v1628_v2 = vrot.slane %v1626_v60, 4 }
 0x96e   :  { %1629 = vrot.lane.b32.xlu2 %v1628_v2, %s2386_s12 }
 0x9c8   :  { %v1630_v24 = vpop.permute.xlu2 %1629 }
 0x9c9   :  { %2212 = vmatmul.msk.f32.vlgmr.msrb.gmra.mxu2 %vm1426_vm11, %v1630_v24 }
 0xa4c   :  { %v1650_v50 = vpop.f32.mrf.mxu2 }
 0xa4d   :  { %v1654_v8 = vrot.slane %v1650_v50, 2 }
 0xa4f   :  { %v1656_v13 = vadd.f32 %v1654_v8, %v3761_v43 }
 0xa51   :  { %2349 = vtanh.f32 %v1656_v13  ;;  %v2213_v31 = vmul.f32 -1.442695, %v1656_v13 }
 0xa53   :  { %2351 = vpow2.f32 %v2213_v31 }
 0xa57   :  { %v2350_v36 = vpop.eup %2349 }
 0xa58   :  { %1682 = vrot.lane.b32.xlu0 %v2350_v36, %s2385_s11 }
 0xa59   :  { %v2352_v14 = vpop.eup %2351 }
 0xa5a   :  { %v1660_v27 = vadd.f32 1.0, %v2352_v14 }
 0xa5c   :  { %2353 = vrcp.f32 %v1660_v27  ;;  %v1672_v3 = vand.u32 2147483648, %v1660_v27  ;;  %vm1666_vm5 = vweird.f32 %v1660_v27  ;;  %v1670_v52 = vand.u32 2147483647, %v1660_v27 }
 0xa5e   :  { %v1673_v51 = vor.u32 1.1754944e-38, %v1672_v3  ;;  %vm1671_vm7 = vcmp.eq.f32.partialorder %v1670_v52, 8.507059e+37 }
 0xa62   :  { %v2354_v9 = vpop.eup %2353 }
 0xa63   :  { %v1662_v26 = vmul.f32 %v2354_v9, %v1660_v27  ;;  %vm1667_vm4 = vweird.f32 %v2354_v9 }
 0xa64   :  { %vm1668_vm6 = vmor %vm1666_vm5, %vm1667_vm4 }
 0xa65   :  { %v1663_v0 = vsub.f32 1.0, %v1662_v26 }
 0xa67   :  { %v1664_v34 = vmul.f32 %v2354_v9, %v1663_v0 }
 0xa69   :  { %v1665_v42 = vadd.f32 %v2354_v9, %v1664_v34 }
 0xa6b   :  { %v1669_v43 = vsel %vm1668_vm6, %v2354_v9, %v1665_v42 }
 0xa6c   :  { %v1674_v55 = vsel %vm1671_vm7, %v1673_v51, %v1669_v43 }
 0xa6d   :  { %v1680_v32 = vmul.f32 %v1678_v28, %v1674_v55 }
 0xaca   :  { %v1683_v6 = vpop.permute.xlu0 %1682 }
 0xacb   :  { %v1685_v18 = vmul.f32 %v1683_v6, %v1674_v55 }
 0xacd   :  { %1687 = vrot.lane.b32.xlu1 %v1685_v18, %s2386_s12 }
 0xb3f   :  { %v1688_v53 = vpop.permute.xlu1 %1687 }
 0xb40   :  { %v1690_v48 = vadd.f32 %v1688_v53, %v1680_v32 }
 0xb42   :  { %2355 = vtanh.f32 %v1690_v48 }
 0xb48   :  { %v2356_v16 = vpop.eup %2355 }
 0xb49   :  { %1693 = vrot.lane.b32.xlu2 %v2356_v16, %s2385_s11 }
 0xba3   :  { %v1694_v25 = vpop.permute.xlu2 %1693 }
 0xba4   :  { %v1696_v7 = vmul.f32 %v1694_v25, %v1674_v55 }
 0xba6   :  { %v1703_v47 = vrot.slane %v1696_v7, 6 }
 0xba8   :  { %1704 = vrot.lane.b32.xlu0 %v1703_v47, %s2386_s12 }
 0xc1a   :  { %v1705_v57 = vpop.permute.xlu0 %1704 }
 0xc1b   :  { %2214 = vmatmul.msk.f32.vlgmr.msra.gmra.mxu1 %vm1426_vm11, %v1705_v57 }
 0xc98   :  { %v1725_v1 = vpop.f32.mrf.mxu1 }
 0xc99   :  { %v1726_v45 = vadd.f32 %v1725_v1, %v1701_v62 }
 0xc9b   :  { %v1728_v4 = vmax.f32 %v1726_v45, 0.0 }
 0xc9d   :  { %1762 = vmatmul.f32.vlgmr.msrb.gmra.mxu3 %v1728_v4 }
 0xd20   :  { %v1763_v10 = vpop.f32.mrf.mxu3 }
 0xd21   :  { %v1764_v63 = vadd.f32 %v1763_v10, %v1745_v61 }
 0xd23   :  { %1766 = vst [vmem:[#allocation2] sm:$0x3] %v1764_v63 }
 0xd24   :  { %1777 = dma.vmem_to_hbm [thread:$0]  %s1773_s27, 32, %s1775_s30, [#allocation3]  }
 0xd25   :  { %2382 = dma.done.wait [#allocation3], 32  }
 0xd26   :  { %2383 = vsyncadd [#allocation3], 4294967264 }
 0xd27   :  { %1782 = vsyncpa [#allocation3], 1 }

</bundles_post_ra>
